<compile_context>
chip_gen: v7x
topology: tpu7x:2x2x1
jax: 0.10.0
libtpu: 0.0.40
codegen_flags: <defaults>
</compile_context>

<pallas_src>
import functools

import jax
import jax.numpy as jnp
from jax.experimental import pallas as pl
from jax.experimental.pallas import tpu as pltpu

LANE = 128
OUT_PAD = 128            # lane-dense output slab: q1 -> cols [0,64), q2 -> cols [64,128)
Q2_COL = OUT_PAD // 2
MIN_TB = 16              # bf16 packs 2 rows/sublane -> tiles a multiple of 16 rows
DEFAULT_TB = 1024        # amortizes ~0.35us/step overhead; fits v7x's 64 MiB VMEM


def _round_up(x, m):
    return ((x + m - 1) // m) * m


# ----------------------------------------------------------------------------
# Kernel: whole fused MLP on one (TB, *) batch tile.
# ----------------------------------------------------------------------------
def _critic_twin_kernel(x_ref,
                        w1_ref, b1_ref,
                        w2_ref, b2_ref,
                        wh_ref, bh_ref,
                        wq1_ref, wq2_ref, bo_ref,
                        out_ref):
    cdt = w1_ref.dtype                        # matmul-input dtype (bf16)
    mp = wq1_ref.shape[1]

    # Layer 1: state|action already fused into one K = state_dim+action_dim matmul.
    x = x_ref[...].astype(cdt)                # f32 -> bf16 cast rides in a free VPU slot
    h = jnp.dot(x, w1_ref[...], preferred_element_type=jnp.float32) + b1_ref[...]
    h = jnp.maximum(h, 0.0).astype(cdt)

    # Layer 2.
    h = jnp.dot(h, w2_ref[...], preferred_element_type=jnp.float32) + b2_ref[...]
    h = jnp.maximum(h, 0.0).astype(cdt)

    # Fused twin hidden heads: q1 hidden in cols [0, MP), q2 hidden in [MP, 2*MP).
    g = jnp.dot(h, wh_ref[...], preferred_element_type=jnp.float32) + bh_ref[...]
    g = jnp.maximum(g, 0.0)                   # keep f32 for the VPU/XLU head reduction

    # Final scalar heads on VPU + XLU instead of a 2*MP x 128 MXU matmul.
    q1 = jnp.sum(g[:, :mp] * wq1_ref[...], axis=-1, keepdims=True)
    q2 = jnp.sum(g[:, mp:] * wq2_ref[...], axis=-1, keepdims=True)

    # Lane-dense (TB, 128) slab, single unmasked store (bias lives in bo).
    tb, width = out_ref.shape
    lane = jax.lax.broadcasted_iota(jnp.int32, (tb, width), 1)
    slab = jnp.where(lane < (width // 2),
                     jnp.broadcast_to(q1, (tb, width)),
                     jnp.broadcast_to(q2, (tb, width)))
    out_ref[...] = slab + bo_ref[...]


# ----------------------------------------------------------------------------
# Parameter init (mimics nn.Linear U(-1/sqrt(fan_in), 1/sqrt(fan_in))) and packing
# into the padded / fused kernel layout.
# ----------------------------------------------------------------------------
def _init_linear(key, in_dim, out_dim):
    kw, kb = jax.random.split(key)
    bound = 1.0 / jnp.sqrt(jnp.float32(in_dim))
    w = jax.random.uniform(kw, (in_dim, out_dim), jnp.float32, -bound, bound)
    b = jax.random.uniform(kb, (1, out_dim), jnp.float32, -bound, bound)
    return w, b


def init_critic_twin_params(key, mid_dim, state_dim, action_dim):
    keys = jax.random.split(key, 6)
    in_dim = state_dim + action_dim
    raw = {}
    raw["sa_w1"], raw["sa_b1"] = _init_linear(keys[0], in_dim, mid_dim)
    raw["sa_w2"], raw["sa_b2"] = _init_linear(keys[1], mid_dim, mid_dim)
    raw["q1_w1"], raw["q1_b1"] = _init_linear(keys[2], mid_dim, mid_dim)
    raw["q1_w2"], raw["q1_b2"] = _init_linear(keys[3], mid_dim, 1)
    raw["q2_w1"], raw["q2_b1"] = _init_linear(keys[4], mid_dim, mid_dim)
    raw["q2_w2"], raw["q2_b2"] = _init_linear(keys[5], mid_dim, 1)
    return raw


def pack_critic_twin_params(raw, state_dim, action_dim, mid_dim,
                            compute_dtype=jnp.bfloat16):
    """Pad hidden width to a multiple of 128, fuse twin heads, cast matmul weights to
    `compute_dtype`; biases and the scalar-head weights stay f32 (VPU epilogue)."""
    in_dim = state_dim + action_dim
    MP = _round_up(mid_dim, LANE)

    w1 = jnp.zeros((in_dim, MP), jnp.float32).at[:, :mid_dim].set(raw["sa_w1"])
    b1 = jnp.zeros((1, MP), jnp.float32).at[:, :mid_dim].set(raw["sa_b1"])

    w2 = jnp.zeros((MP, MP), jnp.float32).at[:mid_dim, :mid_dim].set(raw["sa_w2"])
    b2 = jnp.zeros((1, MP), jnp.float32).at[:, :mid_dim].set(raw["sa_b2"])

    wh = (jnp.zeros((MP, 2 * MP), jnp.float32)
          .at[:mid_dim, :mid_dim].set(raw["q1_w1"])
          .at[:mid_dim, MP:MP + mid_dim].set(raw["q2_w1"]))
    bh = (jnp.zeros((1, 2 * MP), jnp.float32)
          .at[:, :mid_dim].set(raw["q1_b1"])
          .at[:, MP:MP + mid_dim].set(raw["q2_b1"]))

    wq1 = jnp.zeros((1, MP), jnp.float32).at[0, :mid_dim].set(raw["q1_w2"][:, 0])
    wq2 = jnp.zeros((1, MP), jnp.float32).at[0, :mid_dim].set(raw["q2_w2"][:, 0])
    bo = (jnp.zeros((1, OUT_PAD), jnp.float32)
          .at[:, :Q2_COL].set(raw["q1_b2"][0, 0])
          .at[:, Q2_COL:].set(raw["q2_b2"][0, 0]))

    return {
        "w1": w1.astype(compute_dtype), "b1": b1,
        "w2": w2.astype(compute_dtype), "b2": b2,
        "wh": wh.astype(compute_dtype), "bh": bh,
        "wq1": wq1, "wq2": wq2, "bo": bo,
    }


# ----------------------------------------------------------------------------
# pallas_call wrapper
# ----------------------------------------------------------------------------
_WEIGHT_NAMES = ("w1", "b1", "w2", "b2", "wh", "bh", "wq1", "wq2", "bo")


@functools.partial(jax.jit, static_argnames=("tb", "single_buffer_weights"))
def _critic_twin_slab(packed, state, action, tb, single_buffer_weights):
    B = state.shape[0]
    in_dim = state.shape[1] + action.shape[1]
    MP = packed["w2"].shape[0]
    b_pad = _round_up(B, tb)

    # One fused state|action stream (replaces split-K layer 1).  Stay f32 here; the
    # kernel does the bf16 cast.  Pad the batch only when B is not a multiple of tb.
    x = jnp.concatenate((state, action), axis=1).astype(jnp.float32)
    if b_pad != B:
        x = jnp.pad(x, ((0, b_pad - B), (0, 0)))

    row = lambda i: (i, 0)     # batch-tiled operands
    const = lambda i: (0, 0)   # VMEM-resident weights / biases

    if single_buffer_weights:
        # Constant index_map -> no need to double-buffer; halves resident-weight VMEM.
        weight_specs = [pl.BlockSpec(packed[n].shape, const,
                                     pipeline_mode=pl.Buffered(1))
                        for n in _WEIGHT_NAMES]
    else:
        weight_specs = [pl.BlockSpec(packed[n].shape, const) for n in _WEIGHT_NAMES]

    weight_bytes = sum(int(packed[n].size) * packed[n].dtype.itemsize
                       for n in _WEIGHT_NAMES)
    flops = 2 * b_pad * (in_dim * MP + MP * MP + MP * 2 * MP) + 4 * b_pad * MP
    bytes_accessed = int(x.size) * 4 + b_pad * OUT_PAD * 4 + weight_bytes

    out = pl.pallas_call(
        _critic_twin_kernel,
        out_shape=jax.ShapeDtypeStruct((b_pad, OUT_PAD), jnp.float32),
        grid=(b_pad // tb,),
        in_specs=[pl.BlockSpec((tb, in_dim), row)] + weight_specs,
        out_specs=pl.BlockSpec((tb, OUT_PAD), row),
        compiler_params=pltpu.CompilerParams(
            dimension_semantics=("parallel",),
            vmem_limit_bytes=64 * 1024 * 1024),
        cost_estimate=pl.CostEstimate(
            flops=flops, transcendentals=0, bytes_accessed=bytes_accessed),
    )(x, *(packed[n] for n in _WEIGHT_NAMES))
    return out[:B]


_SINGLE_BUFFER_OK = True  # flipped off (and cached) if the runtime rejects Buffered(1)


def _run_slab(packed, state, action, tb):
    global _SINGLE_BUFFER_OK
    if _SINGLE_BUFFER_OK:
        try:
            return _critic_twin_slab(packed, state, action, tb,
                                     single_buffer_weights=True)
        except Exception:
            _SINGLE_BUFFER_OK = False
    return _critic_twin_slab(packed, state, action, tb,
                             single_buffer_weights=False)


def _choose_tb(batch):
    # Aim for an even grid of >= 2 steps (both v7x TensorCores busy) while keeping
    # each tile large enough to amortize per-step pipeline overhead; min 16 rows so
    # bf16 tiles stay natively sublane-packed.
    half = _round_up(-(-batch // 2), MIN_TB)
    return max(MIN_TB, min(DEFAULT_TB, half))


def critic_twin_forward(packed, state, action, tb=None):
    """Equivalent to CriticTwin.forward(state, action) -> q1 of shape [B, 1]."""
    tb = _choose_tb(state.shape[0]) if tb is None else tb
    out = _run_slab(packed, state, action, tb)
    return out[:, 0:1]


def critic_twin_get_q1_q2(packed, state, action, tb=None):
    """Equivalent to CriticTwin.get_q1_q2(state, action) -> (q1, q2)."""
    tb = _choose_tb(state.shape[0]) if tb is None else tb
    out = _run_slab(packed, state, action, tb)
    return out[:, 0:1], out[:, Q2_COL:Q2_COL + 1]


# ----------------------------------------------------------------------------
# Pure-JAX references for correctness checks
# ----------------------------------------------------------------------------
def _reference_packed(packed, state, action):
    """Same padded/fused bf16-matmul + f32 VPU-head math as the kernel (tight check)."""
    cdt = packed["w1"].dtype
    MP = packed["w2"].shape[0]
    x = jnp.concatenate((state, action), axis=1).astype(jnp.float32).astype(cdt)
    h = jnp.dot(x, packed["w1"], preferred_element_type=jnp.float32) + packed["b1"]
    h = jnp.maximum(h, 0.0).astype(cdt)
    h = jnp.dot(h, packed["w2"], preferred_element_type=jnp.float32) + packed["b2"]
    h = jnp.maximum(h, 0.0).astype(cdt)
    g = jnp.dot(h, packed["wh"], preferred_element_type=jnp.float32) + packed["bh"]
    g = jnp.maximum(g, 0.0)
    q1 = jnp.sum(g[:, :MP] * packed["wq1"], axis=-1, keepdims=True) + packed["bo"][0, 0]
    q2 = (jnp.sum(g[:, MP:] * packed["wq2"], axis=-1, keepdims=True)
          + packed["bo"][0, Q2_COL])
    return q1, q2


def _reference_f32(raw, state, action):
    """Original (unpadded, f32) module math (loose check vs bf16 kernel)."""
    x = jnp.concatenate((state, action), axis=1).astype(jnp.float32)
    h = jnp.maximum(x @ raw["sa_w1"] + raw["sa_b1"], 0.0)
    h = jnp.maximum(h @ raw["sa_w2"] + raw["sa_b2"], 0.0)
    q1 = jnp.maximum(h @ raw["q1_w1"] + raw["q1_b1"], 0.0) @ raw["q1_w2"] + raw["q1_b2"]
    q2 = jnp.maximum(h @ raw["q2_w1"] + raw["q2_b1"], 0.0) @ raw["q2_w2"] + raw["q2_b2"]
    return q1, q2


if __name__ == "__main__":
    batch, state_dim, action_dim, mid_dim = 2, 16, 8, 32

    key = jax.random.PRNGKey(0)
    k_params, k_state, k_action = jax.random.split(key, 3)

    raw = init_critic_twin_params(k_params, mid_dim, state_dim, action_dim)
    packed = pack_critic_twin_params(raw, state_dim, action_dim, mid_dim)

    state = jax.random.normal(k_state, (batch, state_dim), jnp.float32)
    action = jax.random.normal(k_action, (batch, action_dim), jnp.float32)

    q1 = critic_twin_forward(packed, state, action)
    q1 = jax.block_until_ready(q1)

    q1b, q2b = critic_twin_get_q1_q2(packed, state, action)
    jax.block_until_ready((q1b, q2b))

    assert q1.shape == (batch, 1)
    assert q1b.shape == (batch, 1) and q2b.shape == (batch, 1)

    # Tight check against the identically-packed bf16 reference.
    r1, r2 = _reference_packed(packed, state, action)
    assert jnp.allclose(q1, r1, atol=2e-3, rtol=2e-3)
    assert jnp.allclose(q1b, r1, atol=2e-3, rtol=2e-3)
    assert jnp.allclose(q2b, r2, atol=2e-3, rtol=2e-3)

    # Loose check against the original f32 module math (bf16 matmul inputs).
    f1, f2 = _reference_f32(raw, state, action)
    assert jnp.allclose(q1b, f1, atol=7e-2, rtol=7e-2)
    assert jnp.allclose(q2b, f2, atol=7e-2, rtol=7e-2)

    # Exercise the multi-tile (grid >= 2) + batch-padding path at a small odd batch.
    batch2 = 40
    k2s, k2a = jax.random.split(jax.random.PRNGKey(1))
    state2 = jax.random.normal(k2s, (batch2, state_dim), jnp.float32)
    action2 = jax.random.normal(k2a, (batch2, action_dim), jnp.float32)
    g1, g2 = critic_twin_get_q1_q2(packed, state2, action2)
    jax.block_until_ready((g1, g2))
    rr1, rr2 = _reference_packed(packed, state2, action2)
    assert g1.shape == (batch2, 1) and g2.shape == (batch2, 1)
    assert jnp.allclose(g1, rr1, atol=2e-3, rtol=2e-3)
    assert jnp.allclose(g2, rr2, atol=2e-3, rtol=2e-3)

    print("KERNEL_OK")
</pallas_src>

<mosaic_0001>
module attributes {stable_mosaic.version = 11 : i64} {
  func.func @_critic_twin_kernel(%arg0: i32, %arg1: memref<16x24xf32, #tpu.memory_space<vmem>>, %arg2: memref<24x128xbf16, #tpu.memory_space<vmem>>, %arg3: memref<1x128xf32, #tpu.memory_space<vmem>>, %arg4: memref<128x128xbf16, #tpu.memory_space<vmem>>, %arg5: memref<1x128xf32, #tpu.memory_space<vmem>>, %arg6: memref<128x256xbf16, #tpu.memory_space<vmem>>, %arg7: memref<1x256xf32, #tpu.memory_space<vmem>>, %arg8: memref<1x128xf32, #tpu.memory_space<vmem>>, %arg9: memref<1x128xf32, #tpu.memory_space<vmem>>, %arg10: memref<1x128xf32, #tpu.memory_space<vmem>>, %arg11: memref<16x128xf32, #tpu.memory_space<vmem>>) attributes {dimension_semantics = [#tpu.dimension_semantics<parallel>], iteration_bounds = array<i64: 1>, scalar_prefetch = 0 : i64, scratch_operands = 0 : i64, tpu.core_type = #tpu.core_type<tc>, window_params = [{transform_indices = @transform_0, window_bounds = array<i64: 16, 24>}, {pipeline_mode = #tpu.pipeline_mode<synchronous>, transform_indices = @transform_1, window_bounds = array<i64: 24, 128>}, {pipeline_mode = #tpu.pipeline_mode<synchronous>, transform_indices = @transform_2, window_bounds = array<i64: 1, 128>}, {pipeline_mode = #tpu.pipeline_mode<synchronous>, transform_indices = @transform_3, window_bounds = array<i64: 128, 128>}, {pipeline_mode = #tpu.pipeline_mode<synchronous>, transform_indices = @transform_4, window_bounds = array<i64: 1, 128>}, {pipeline_mode = #tpu.pipeline_mode<synchronous>, transform_indices = @transform_5, window_bounds = array<i64: 128, 256>}, {pipeline_mode = #tpu.pipeline_mode<synchronous>, transform_indices = @transform_6, window_bounds = array<i64: 1, 256>}, {pipeline_mode = #tpu.pipeline_mode<synchronous>, transform_indices = @transform_7, window_bounds = array<i64: 1, 128>}, {pipeline_mode = #tpu.pipeline_mode<synchronous>, transform_indices = @transform_8, window_bounds = array<i64: 1, 128>}, {pipeline_mode = #tpu.pipeline_mode<synchronous>, transform_indices = @transform_9, window_bounds = array<i64: 1, 128>}, {transform_indices = @transform_10, window_bounds = array<i64: 16, 128>}]} {
    %c0 = arith.constant 0 : index
    %c0_0 = arith.constant 0 : index
    %0 = vector.load %arg1[%c0, %c0_0] : memref<16x24xf32, #tpu.memory_space<vmem>>, vector<16x24xf32>
    %1 = arith.truncf %0 : vector<16x24xf32> to vector<16x24xbf16>
    %c0_1 = arith.constant 0 : index
    %c0_2 = arith.constant 0 : index
    %2 = vector.load %arg2[%c0_1, %c0_2] : memref<24x128xbf16, #tpu.memory_space<vmem>>, vector<24x128xbf16>
    %cst = arith.constant dense<0.000000e+00> : vector<16x128xf32>
    %3 = tpu.matmul %1, %2, %cst {dimension_numbers = #tpu.dot_dimension_numbers<[1], [0], [0], [1], [0, 0, 1, 1], [], []>} : vector<16x24xbf16>, vector<24x128xbf16>, vector<16x128xf32> -> vector<16x128xf32>
    %c0_3 = arith.constant 0 : index
    %c0_4 = arith.constant 0 : index
    %4 = vector.load %arg3[%c0_3, %c0_4] : memref<1x128xf32, #tpu.memory_space<vmem>>, vector<1x128xf32>
    %5 = vector.broadcast %4 : vector<1x128xf32> to vector<16x128xf32>
    %6 = arith.addf %3, %5 : vector<16x128xf32>
    %cst_5 = arith.constant 0.000000e+00 : f32
    %7 = vector.broadcast %cst_5 : f32 to vector<16x128xf32>
    %8 = arith.maximumf %6, %7 : vector<16x128xf32>
    %9 = arith.truncf %8 : vector<16x128xf32> to vector<16x128xbf16>
    %c0_6 = arith.constant 0 : index
    %c0_7 = arith.constant 0 : index
    %10 = vector.load %arg4[%c0_6, %c0_7] : memref<128x128xbf16, #tpu.memory_space<vmem>>, vector<128x128xbf16>
    %cst_8 = arith.constant dense<0.000000e+00> : vector<16x128xf32>
    %11 = tpu.matmul %9, %10, %cst_8 {dimension_numbers = #tpu.dot_dimension_numbers<[1], [0], [0], [1], [0, 0, 1, 1], [], []>} : vector<16x128xbf16>, vector<128x128xbf16>, vector<16x128xf32> -> vector<16x128xf32>
    %c0_9 = arith.constant 0 : index
    %c0_10 = arith.constant 0 : index
    %12 = vector.load %arg5[%c0_9, %c0_10] : memref<1x128xf32, #tpu.memory_space<vmem>>, vector<1x128xf32>
    %13 = vector.broadcast %12 : vector<1x128xf32> to vector<16x128xf32>
    %14 = arith.addf %11, %13 : vector<16x128xf32>
    %cst_11 = arith.constant 0.000000e+00 : f32
    %15 = vector.broadcast %cst_11 : f32 to vector<16x128xf32>
    %16 = arith.maximumf %14, %15 : vector<16x128xf32>
    %17 = arith.truncf %16 : vector<16x128xf32> to vector<16x128xbf16>
    %c0_12 = arith.constant 0 : index
    %c0_13 = arith.constant 0 : index
    %18 = vector.load %arg6[%c0_12, %c0_13] : memref<128x256xbf16, #tpu.memory_space<vmem>>, vector<128x256xbf16>
    %cst_14 = arith.constant dense<0.000000e+00> : vector<16x256xf32>
    %19 = tpu.matmul %17, %18, %cst_14 {dimension_numbers = #tpu.dot_dimension_numbers<[1], [0], [0], [1], [0, 0, 1, 1], [], []>} : vector<16x128xbf16>, vector<128x256xbf16>, vector<16x256xf32> -> vector<16x256xf32>
    %c0_15 = arith.constant 0 : index
    %c0_16 = arith.constant 0 : index
    %20 = vector.load %arg7[%c0_15, %c0_16] : memref<1x256xf32, #tpu.memory_space<vmem>>, vector<1x256xf32>
    %21 = vector.broadcast %20 : vector<1x256xf32> to vector<16x256xf32>
    %22 = arith.addf %19, %21 : vector<16x256xf32>
    %cst_17 = arith.constant 0.000000e+00 : f32
    %23 = vector.broadcast %cst_17 : f32 to vector<16x256xf32>
    %24 = arith.maximumf %22, %23 : vector<16x256xf32>
    %25 = vector.extract_strided_slice %24 {offsets = [0, 0], sizes = [16, 128], strides = [1, 1]} : vector<16x256xf32> to vector<16x128xf32>
    %c0_18 = arith.constant 0 : index
    %c0_19 = arith.constant 0 : index
    %26 = vector.load %arg8[%c0_18, %c0_19] : memref<1x128xf32, #tpu.memory_space<vmem>>, vector<1x128xf32>
    %27 = vector.broadcast %26 : vector<1x128xf32> to vector<16x128xf32>
    %28 = arith.mulf %25, %27 : vector<16x128xf32>
    %cst_20 = arith.constant dense<0.000000e+00> : vector<16xf32>
    %29 = vector.multi_reduction <add>, %28, %cst_20 [1] : vector<16x128xf32> to vector<16xf32>
    %30 = vector.shape_cast %29 : vector<16xf32> to vector<16x1xf32>
    %31 = vector.extract_strided_slice %24 {offsets = [0, 128], sizes = [16, 128], strides = [1, 1]} : vector<16x256xf32> to vector<16x128xf32>
    %c0_21 = arith.constant 0 : index
    %c0_22 = arith.constant 0 : index
    %32 = vector.load %arg9[%c0_21, %c0_22] : memref<1x128xf32, #tpu.memory_space<vmem>>, vector<1x128xf32>
    %33 = vector.broadcast %32 : vector<1x128xf32> to vector<16x128xf32>
    %34 = arith.mulf %31, %33 : vector<16x128xf32>
    %cst_23 = arith.constant dense<0.000000e+00> : vector<16xf32>
    %35 = vector.multi_reduction <add>, %34, %cst_23 [1] : vector<16x128xf32> to vector<16xf32>
    %36 = vector.shape_cast %35 : vector<16xf32> to vector<16x1xf32>
    %37 = tpu.iota {dimensions = array<i32: 1>} : vector<16x128xi32>
    %c64_i32 = arith.constant 64 : i32
    %38 = vector.broadcast %c64_i32 : i32 to vector<16x128xi32>
    %39 = arith.cmpi slt, %37, %38 : vector<16x128xi32>
    %40 = vector.shape_cast %30 : vector<16x1xf32> to vector<16x1xf32>
    %41 = vector.broadcast %40 : vector<16x1xf32> to vector<16x128xf32>
    %42 = vector.shape_cast %36 : vector<16x1xf32> to vector<16x1xf32>
    %43 = vector.broadcast %42 : vector<16x1xf32> to vector<16x128xf32>
    %44 = arith.select %39, %41, %43 : vector<16x128xi1>, vector<16x128xf32>
    %c0_24 = arith.constant 0 : index
    %c0_25 = arith.constant 0 : index
    %45 = vector.load %arg10[%c0_24, %c0_25] : memref<1x128xf32, #tpu.memory_space<vmem>>, vector<1x128xf32>
    %46 = vector.broadcast %45 : vector<1x128xf32> to vector<16x128xf32>
    %47 = arith.addf %44, %46 : vector<16x128xf32>
    %c0_26 = arith.constant 0 : index
    %c0_27 = arith.constant 0 : index
    %48 = vector.load %arg11[%c0_26, %c0_27] : memref<16x128xf32, #tpu.memory_space<vmem>>, vector<16x128xf32>
    tpu.vector_store %arg11[%c0_26, %c0_27], %47 {strides = array<i32>} : memref<16x128xf32, #tpu.memory_space<vmem>>, vector<16x128xf32>,
    return
  }
  func.func @transform_0(%arg0: i32) -> (i32, i32) {
    %c0_i32 = arith.constant 0 : i32
    %c0_i32_0 = arith.constant 0 : i32
    return %arg0, %c0_i32 : i32, i32
  }
  func.func @transform_1(%arg0: i32) -> (i32, i32) {
    %c0_i32 = arith.constant 0 : i32
    %c0_i32_0 = arith.constant 0 : i32
    %c0_i32_1 = arith.constant 0 : i32
    return %c0_i32, %c0_i32_0 : i32, i32
  }
  func.func @transform_2(%arg0: i32) -> (i32, i32) {
    %c0_i32 = arith.constant 0 : i32
    %c0_i32_0 = arith.constant 0 : i32
    %c0_i32_1 = arith.constant 0 : i32
    return %c0_i32, %c0_i32_0 : i32, i32
  }
  func.func @transform_3(%arg0: i32) -> (i32, i32) {
    %c0_i32 = arith.constant 0 : i32
    %c0_i32_0 = arith.constant 0 : i32
    %c0_i32_1 = arith.constant 0 : i32
    return %c0_i32, %c0_i32_0 : i32, i32
  }
  func.func @transform_4(%arg0: i32) -> (i32, i32) {
    %c0_i32 = arith.constant 0 : i32
    %c0_i32_0 = arith.constant 0 : i32
    %c0_i32_1 = arith.constant 0 : i32
    return %c0_i32, %c0_i32_0 : i32, i32
  }
  func.func @transform_5(%arg0: i32) -> (i32, i32) {
    %c0_i32 = arith.constant 0 : i32
    %c0_i32_0 = arith.constant 0 : i32
    %c0_i32_1 = arith.constant 0 : i32
    return %c0_i32, %c0_i32_0 : i32, i32
  }
  func.func @transform_6(%arg0: i32) -> (i32, i32) {
    %c0_i32 = arith.constant 0 : i32
    %c0_i32_0 = arith.constant 0 : i32
    %c0_i32_1 = arith.constant 0 : i32
    return %c0_i32, %c0_i32_0 : i32, i32
  }
  func.func @transform_7(%arg0: i32) -> (i32, i32) {
    %c0_i32 = arith.constant 0 : i32
    %c0_i32_0 = arith.constant 0 : i32
    %c0_i32_1 = arith.constant 0 : i32
    return %c0_i32, %c0_i32_0 : i32, i32
  }
  func.func @transform_8(%arg0: i32) -> (i32, i32) {
    %c0_i32 = arith.constant 0 : i32
    %c0_i32_0 = arith.constant 0 : i32
    %c0_i32_1 = arith.constant 0 : i32
    return %c0_i32, %c0_i32_0 : i32, i32
  }
  func.func @transform_9(%arg0: i32) -> (i32, i32) {
    %c0_i32 = arith.constant 0 : i32
    %c0_i32_0 = arith.constant 0 : i32
    %c0_i32_1 = arith.constant 0 : i32
    return %c0_i32, %c0_i32_0 : i32, i32
  }
  func.func @transform_10(%arg0: i32) -> (i32, i32) {
    %c0_i32 = arith.constant 0 : i32
    %c0_i32_0 = arith.constant 0 : i32
    return %arg0, %c0_i32 : i32, i32
  }
}

module attributes {stable_mosaic.version = 11 : i64} {
  func.func @_critic_twin_kernel(%arg0: i32, %arg1: memref<16x24xf32, #tpu.memory_space<vmem>>, %arg2: memref<24x128xbf16, #tpu.memory_space<vmem>>, %arg3: memref<1x128xf32, #tpu.memory_space<vmem>>, %arg4: memref<128x128xbf16, #tpu.memory_space<vmem>>, %arg5: memref<1x128xf32, #tpu.memory_space<vmem>>, %arg6: memref<128x256xbf16, #tpu.memory_space<vmem>>, %arg7: memref<1x256xf32, #tpu.memory_space<vmem>>, %arg8: memref<1x128xf32, #tpu.memory_space<vmem>>, %arg9: memref<1x128xf32, #tpu.memory_space<vmem>>, %arg10: memref<1x128xf32, #tpu.memory_space<vmem>>, %arg11: memref<16x128xf32, #tpu.memory_space<vmem>>) attributes {dimension_semantics = [#tpu.dimension_semantics<parallel>], iteration_bounds = array<i64: 1>, scalar_prefetch = 0 : i64, scratch_operands = 0 : i64, tpu.core_type = #tpu.core_type<tc>, window_params = [{transform_indices = @transform_0, window_bounds = array<i64: 16, 24>}, {pipeline_mode = #tpu.pipeline_mode<synchronous>, transform_indices = @transform_1, window_bounds = array<i64: 24, 128>}, {pipeline_mode = #tpu.pipeline_mode<synchronous>, transform_indices = @transform_2, window_bounds = array<i64: 1, 128>}, {pipeline_mode = #tpu.pipeline_mode<synchronous>, transform_indices = @transform_3, window_bounds = array<i64: 128, 128>}, {pipeline_mode = #tpu.pipeline_mode<synchronous>, transform_indices = @transform_4, window_bounds = array<i64: 1, 128>}, {pipeline_mode = #tpu.pipeline_mode<synchronous>, transform_indices = @transform_5, window_bounds = array<i64: 128, 256>}, {pipeline_mode = #tpu.pipeline_mode<synchronous>, transform_indices = @transform_6, window_bounds = array<i64: 1, 256>}, {pipeline_mode = #tpu.pipeline_mode<synchronous>, transform_indices = @transform_7, window_bounds = array<i64: 1, 128>}, {pipeline_mode = #tpu.pipeline_mode<synchronous>, transform_indices = @transform_8, window_bounds = array<i64: 1, 128>}, {pipeline_mode = #tpu.pipeline_mode<synchronous>, transform_indices = @transform_9, window_bounds = array<i64: 1, 128>}, {transform_indices = @transform_10, window_bounds = array<i64: 16, 128>}]} {
    %c0 = arith.constant 0 : index
    %c0_0 = arith.constant 0 : index
    %0 = vector.load %arg1[%c0, %c0_0] : memref<16x24xf32, #tpu.memory_space<vmem>>, vector<16x24xf32>
    %1 = arith.truncf %0 : vector<16x24xf32> to vector<16x24xbf16>
    %c0_1 = arith.constant 0 : index
    %c0_2 = arith.constant 0 : index
    %2 = vector.load %arg2[%c0_1, %c0_2] : memref<24x128xbf16, #tpu.memory_space<vmem>>, vector<24x128xbf16>
    %cst = arith.constant dense<0.000000e+00> : vector<16x128xf32>
    %3 = tpu.matmul %1, %2, %cst {dimension_numbers = #tpu.dot_dimension_numbers<[1], [0], [0], [1], [0, 0, 1, 1], [], []>} : vector<16x24xbf16>, vector<24x128xbf16>, vector<16x128xf32> -> vector<16x128xf32>
    %c0_3 = arith.constant 0 : index
    %c0_4 = arith.constant 0 : index
    %4 = vector.load %arg3[%c0_3, %c0_4] : memref<1x128xf32, #tpu.memory_space<vmem>>, vector<1x128xf32>
    %5 = vector.broadcast %4 : vector<1x128xf32> to vector<16x128xf32>
    %6 = arith.addf %3, %5 : vector<16x128xf32>
    %cst_5 = arith.constant 0.000000e+00 : f32
    %7 = vector.broadcast %cst_5 : f32 to vector<16x128xf32>
    %8 = arith.maximumf %6, %7 : vector<16x128xf32>
    %9 = arith.truncf %8 : vector<16x128xf32> to vector<16x128xbf16>
    %c0_6 = arith.constant 0 : index
    %c0_7 = arith.constant 0 : index
    %10 = vector.load %arg4[%c0_6, %c0_7] : memref<128x128xbf16, #tpu.memory_space<vmem>>, vector<128x128xbf16>
    %cst_8 = arith.constant dense<0.000000e+00> : vector<16x128xf32>
    %11 = tpu.matmul %9, %10, %cst_8 {dimension_numbers = #tpu.dot_dimension_numbers<[1], [0], [0], [1], [0, 0, 1, 1], [], []>} : vector<16x128xbf16>, vector<128x128xbf16>, vector<16x128xf32> -> vector<16x128xf32>
    %c0_9 = arith.constant 0 : index
    %c0_10 = arith.constant 0 : index
    %12 = vector.load %arg5[%c0_9, %c0_10] : memref<1x128xf32, #tpu.memory_space<vmem>>, vector<1x128xf32>
    %13 = vector.broadcast %12 : vector<1x128xf32> to vector<16x128xf32>
    %14 = arith.addf %11, %13 : vector<16x128xf32>
    %cst_11 = arith.constant 0.000000e+00 : f32
    %15 = vector.broadcast %cst_11 : f32 to vector<16x128xf32>
    %16 = arith.maximumf %14, %15 : vector<16x128xf32>
    %17 = arith.truncf %16 : vector<16x128xf32> to vector<16x128xbf16>
    %c0_12 = arith.constant 0 : index
    %c0_13 = arith.constant 0 : index
    %18 = vector.load %arg6[%c0_12, %c0_13] : memref<128x256xbf16, #tpu.memory_space<vmem>>, vector<128x256xbf16>
    %cst_14 = arith.constant dense<0.000000e+00> : vector<16x256xf32>
    %19 = tpu.matmul %17, %18, %cst_14 {dimension_numbers = #tpu.dot_dimension_numbers<[1], [0], [0], [1], [0, 0, 1, 1], [], []>} : vector<16x128xbf16>, vector<128x256xbf16>, vector<16x256xf32> -> vector<16x256xf32>
    %c0_15 = arith.constant 0 : index
    %c0_16 = arith.constant 0 : index
    %20 = vector.load %arg7[%c0_15, %c0_16] : memref<1x256xf32, #tpu.memory_space<vmem>>, vector<1x256xf32>
    %21 = vector.broadcast %20 : vector<1x256xf32> to vector<16x256xf32>
    %22 = arith.addf %19, %21 : vector<16x256xf32>
    %cst_17 = arith.constant 0.000000e+00 : f32
    %23 = vector.broadcast %cst_17 : f32 to vector<16x256xf32>
    %24 = arith.maximumf %22, %23 : vector<16x256xf32>
    %25 = vector.extract_strided_slice %24 {offsets = [0, 0], sizes = [16, 128], strides = [1, 1]} : vector<16x256xf32> to vector<16x128xf32>
    %c0_18 = arith.constant 0 : index
    %c0_19 = arith.constant 0 : index
    %26 = vector.load %arg8[%c0_18, %c0_19] : memref<1x128xf32, #tpu.memory_space<vmem>>, vector<1x128xf32>
    %27 = vector.broadcast %26 : vector<1x128xf32> to vector<16x128xf32>
    %28 = arith.mulf %25, %27 : vector<16x128xf32>
    %cst_20 = arith.constant dense<0.000000e+00> : vector<16xf32>
    %29 = vector.multi_reduction <add>, %28, %cst_20 [1] : vector<16x128xf32> to vector<16xf32>
    %30 = vector.shape_cast %29 : vector<16xf32> to vector<16x1xf32>
    %31 = vector.extract_strided_slice %24 {offsets = [0, 128], sizes = [16, 128], strides = [1, 1]} : vector<16x256xf32> to vector<16x128xf32>
    %c0_21 = arith.constant 0 : index
    %c0_22 = arith.constant 0 : index
    %32 = vector.load %arg9[%c0_21, %c0_22] : memref<1x128xf32, #tpu.memory_space<vmem>>, vector<1x128xf32>
    %33 = vector.broadcast %32 : vector<1x128xf32> to vector<16x128xf32>
    %34 = arith.mulf %31, %33 : vector<16x128xf32>
    %cst_23 = arith.constant dense<0.000000e+00> : vector<16xf32>
    %35 = vector.multi_reduction <add>, %34, %cst_23 [1] : vector<16x128xf32> to vector<16xf32>
    %36 = vector.shape_cast %35 : vector<16xf32> to vector<16x1xf32>
    %37 = tpu.iota {dimensions = array<i32: 1>} : vector<16x128xi32>
    %c64_i32 = arith.constant 64 : i32
    %38 = vector.broadcast %c64_i32 : i32 to vector<16x128xi32>
    %39 = arith.cmpi slt, %37, %38 : vector<16x128xi32>
    %40 = vector.shape_cast %30 : vector<16x1xf32> to vector<16x1xf32>
    %41 = vector.broadcast %40 : vector<16x1xf32> to vector<16x128xf32>
    %42 = vector.shape_cast %36 : vector<16x1xf32> to vector<16x1xf32>
    %43 = vector.broadcast %42 : vector<16x1xf32> to vector<16x128xf32>
    %44 = arith.select %39, %41, %43 : vector<16x128xi1>, vector<16x128xf32>
    %c0_24 = arith.constant 0 : index
    %c0_25 = arith.constant 0 : index
    %45 = vector.load %arg10[%c0_24, %c0_25] : memref<1x128xf32, #tpu.memory_space<vmem>>, vector<1x128xf32>
    %46 = vector.broadcast %45 : vector<1x128xf32> to vector<16x128xf32>
    %47 = arith.addf %44, %46 : vector<16x128xf32>
    %c0_26 = arith.constant 0 : index
    %c0_27 = arith.constant 0 : index
    %48 = vector.load %arg11[%c0_26, %c0_27] : memref<16x128xf32, #tpu.memory_space<vmem>>, vector<16x128xf32>
    tpu.vector_store %arg11[%c0_26, %c0_27], %47 {strides = array<i32>} : memref<16x128xf32, #tpu.memory_space<vmem>>, vector<16x128xf32>,
    return
  }
  func.func @transform_0(%arg0: i32) -> (i32, i32) {
    %c0_i32 = arith.constant 0 : i32
    %c0_i32_0 = arith.constant 0 : i32
    return %arg0, %c0_i32 : i32, i32
  }
  func.func @transform_1(%arg0: i32) -> (i32, i32) {
    %c0_i32 = arith.constant 0 : i32
    %c0_i32_0 = arith.constant 0 : i32
    %c0_i32_1 = arith.constant 0 : i32
    return %c0_i32, %c0_i32_0 : i32, i32
  }
  func.func @transform_2(%arg0: i32) -> (i32, i32) {
    %c0_i32 = arith.constant 0 : i32
    %c0_i32_0 = arith.constant 0 : i32
    %c0_i32_1 = arith.constant 0 : i32
    return %c0_i32, %c0_i32_0 : i32, i32
  }
  func.func @transform_3(%arg0: i32) -> (i32, i32) {
    %c0_i32 = arith.constant 0 : i32
    %c0_i32_0 = arith.constant 0 : i32
    %c0_i32_1 = arith.constant 0 : i32
    return %c0_i32, %c0_i32_0 : i32, i32
  }
  func.func @transform_4(%arg0: i32) -> (i32, i32) {
    %c0_i32 = arith.constant 0 : i32
    %c0_i32_0 = arith.constant 0 : i32
    %c0_i32_1 = arith.constant 0 : i32
    return %c0_i32, %c0_i32_0 : i32, i32
  }
  func.func @transform_5(%arg0: i32) -> (i32, i32) {
    %c0_i32 = arith.constant 0 : i32
    %c0_i32_0 = arith.constant 0 : i32
    %c0_i32_1 = arith.constant 0 : i32
    return %c0_i32, %c0_i32_0 : i32, i32
  }
  func.func @transform_6(%arg0: i32) -> (i32, i32) {
    %c0_i32 = arith.constant 0 : i32
    %c0_i32_0 = arith.constant 0 : i32
    %c0_i32_1 = arith.constant 0 : i32
    return %c0_i32, %c0_i32_0 : i32, i32
  }
  func.func @transform_7(%arg0: i32) -> (i32, i32) {
    %c0_i32 = arith.constant 0 : i32
    %c0_i32_0 = arith.constant 0 : i32
    %c0_i32_1 = arith.constant 0 : i32
    return %c0_i32, %c0_i32_0 : i32, i32
  }
  func.func @transform_8(%arg0: i32) -> (i32, i32) {
    %c0_i32 = arith.constant 0 : i32
    %c0_i32_0 = arith.constant 0 : i32
    %c0_i32_1 = arith.constant 0 : i32
    return %c0_i32, %c0_i32_0 : i32, i32
  }
  func.func @transform_9(%arg0: i32) -> (i32, i32) {
    %c0_i32 = arith.constant 0 : i32
    %c0_i32_0 = arith.constant 0 : i32
    %c0_i32_1 = arith.constant 0 : i32
    return %c0_i32, %c0_i32_0 : i32, i32
  }
  func.func @transform_10(%arg0: i32) -> (i32, i32) {
    %c0_i32 = arith.constant 0 : i32
    %c0_i32_0 = arith.constant 0 : i32
    return %arg0, %c0_i32 : i32, i32
  }
}

</mosaic_0001>

<bundles_post_ra>
// kernel: _critic_twin_slab.1
= control target key start
LH: loop header
LB: loop body
LE: loop exit
PB: predicated region body
PF: predicated region fallthrough
CT: control target
= control target key end

     0   :  { %15 = vsyncpa [#allocation3], 0  ;;  %s1171_s0 = inlined_call_operand.hbm [shape: f32[16,24], index: 0, kind: input, shape index: {}]   ;;  %s1172_s1 = inlined_call_operand.hbm [shape: bf16[24,128], index: 1, kind: input, shape index: {}]   ;;  %s1173_s2 = inlined_call_operand.hbm [shape: f32[1,128], index: 2, kind: input, shape index: {}]   ;;  %s1174_s3 = inlined_call_operand.hbm [shape: bf16[128,128], index: 3, kind: input, shape index: {}]   ;;  %s1175_s4 = inlined_call_operand.hbm [shape: f32[1,128], index: 4, kind: input, shape index: {}]   ;;  %s1176_s5 = inlined_call_operand.hbm [shape: bf16[128,256], index: 5, kind: input, shape index: {}]   ;;  %s1177_s6 = inlined_call_operand.hbm [shape: f32[1,256], index: 6, kind: input, shape index: {}]   ;;  %s1178_s7 = inlined_call_operand.hbm [shape: f32[1,128], index: 7, kind: input, shape index: {}]   ;;  %s1179_s8 = inlined_call_operand.hbm [shape: f32[1,128], index: 8, kind: input, shape index: {}]   ;;  %s1180_s9 = inlined_call_operand.hbm [shape: f32[1,128], index: 9, kind: input, shape index: {}]   ;;  %s1181_s10 = inlined_call_operand.hbm [shape: f32[16,128], index: 10, kind: output, shape index: {}]  }
   0x1   :  { %16 = vsyncpa [#allocation6], 0 }
   0x2   :  { %17 = vsyncpa [#allocation9], 0 }
   0x3   :  { %18 = vsyncpa [#allocation12], 0 }
   0x4   :  { %19 = vsyncpa [#allocation15], 0 }
   0x5   :  { %20 = vsyncpa [#allocation18], 0 }
   0x6   :  { %21 = vsyncpa [#allocation4], 0  ;;  %s949_s13 = smov [#allocation5]   ;;  %s693_s17 = scalar_lea.hbm %s1172_s1, 192 }
   0x7   :  { %s39_s14 = sshll.u32 %s949_s13, 4  ;;  %p694_p0 = scmp.ne.s32.totalorder %s1172_s1, %s693_s17  ;;  %s40_s14 = int_to_ptr.vmem [resolvable:$true] %s39_s14 }
   0x8   :  { %p697_p1 = scmp.lt.u32.totalorder %s693_s17, %s1172_s1 }
   0xa   :  { %p699_p2 = pnand %p697_p1, %p694_p0 }
   0xc   :  { %702 = shalt.err (!%p699_p2)
}
   0xd   :  { %s703_s22 = scalar_lea.vmem %s40_s14, 192  ;;  %p708_p4 = scmp.lt.s32.totalorder %s40_s14, %s40_s14 }
   0xe   :  { %p704_p3 = scmp.ne.s32.totalorder %s40_s14, %s703_s22  ;;  %p709_p5 = scmp.lt.s32.totalorder %s703_s22, %s703_s22 }
  0x10   :  { %p710_p6 = por %p709_p5, %p708_p4 }
  0x12   :  { %p711_p7 = pnand %p710_p6, %p704_p3 }
  0x14   :  { %714 = shalt.err (!%p711_p7)
}
  0x15   :  { %s950_s23 = smov 64   ;;  %s951_s24 = smov 4  }
  0x16   :  { %45 = dma.hbm_to_vmem [thread:$0]  %s1172_s1, 192, %s40_s14, [#allocation6], %s950_s23, %s950_s23, %s951_s24  }
  0x17   :  { %s952_s27 = smov [#allocation8]   ;;  %s715_s11 = scalar_lea.hbm %s1174_s3, 1024 }
  0x18   :  { %s61_s28 = sshll.u32 %s952_s27, 4  ;;  %p716_p8 = scmp.ne.s32.totalorder %s1174_s3, %s715_s11  ;;  %s62_s28 = int_to_ptr.vmem [resolvable:$true] %s61_s28 }
  0x19   :  { %p719_p9 = scmp.lt.u32.totalorder %s715_s11, %s1174_s3 }
  0x1b   :  { %p721_p10 = pnand %p719_p9, %p716_p8 }
  0x1d   :  { %724 = shalt.err (!%p721_p10)
}
  0x1e   :  { %s725_s17 = scalar_lea.vmem %s62_s28, 1024  ;;  %p730_p12 = scmp.lt.s32.totalorder %s62_s28, %s62_s28 }
  0x1f   :  { %p726_p11 = scmp.ne.s32.totalorder %s62_s28, %s725_s17  ;;  %p731_p13 = scmp.lt.s32.totalorder %s725_s17, %s725_s17 }
  0x21   :  { %p732_p0 = por %p731_p13, %p730_p12 }
  0x23   :  { %p733_p1 = pnand %p732_p0, %p726_p11 }
  0x25   :  { %736 = shalt.err (!%p733_p1)
}
  0x26   :  { %67 = dma.hbm_to_vmem [thread:$0]  %s1174_s3, 1024, %s62_s28, [#allocation9], %s950_s23, %s950_s23, %s951_s24  }
  0x27   :  { %s953_s18 = smov [#allocation11]   ;;  %s954_s20 = smov [#allocation14]  }
  0x28   :  { %s83_s19 = sshll.u32 %s953_s18, 4  ;;  %s106_s21 = sshll.u32 %s954_s20, 4  ;;  %s84_s19 = int_to_ptr.vmem [resolvable:$true] %s83_s19  ;;  %s1046_s21 = int_to_ptr.vmem [resolvable:$true] %s106_s21 }
  0x29   :  { %s737_s26 = scalar_lea.hbm %s1176_s5, 2048 }
  0x2a   :  { %p738_p2 = scmp.ne.s32.totalorder %s1176_s5, %s737_s26  ;;  %p741_p3 = scmp.lt.u32.totalorder %s737_s26, %s1176_s5 }
  0x2c   :  { %p743_p4 = pnand %p741_p3, %p738_p2 }
  0x2e   :  { %746 = shalt.err (!%p743_p4)
}
  0x2f   :  { %s747_s3 = scalar_lea.vmem %s84_s19, 2048  ;;  %p752_p6 = scmp.lt.s32.totalorder %s84_s19, %s84_s19 }
  0x30   :  { %p748_p5 = scmp.ne.s32.totalorder %s84_s19, %s747_s3  ;;  %p753_p7 = scmp.lt.s32.totalorder %s747_s3, %s747_s3 }
  0x32   :  { %p754_p8 = por %p753_p7, %p752_p6 }
  0x34   :  { %p755_p9 = pnand %p754_p8, %p748_p5 }
  0x36   :  { %758 = shalt.err (!%p755_p9)
}
  0x37   :  { %s955_s23 = smov 128   ;;  %s956_s24 = smov 8  }
  0x38   :  { %89 = dma.hbm_to_vmem [thread:$0]  %s1176_s5, 2048, %s84_s19, [#allocation12], %s955_s23, %s955_s23, %s956_s24  }
  0x39   :  { %s759_s16 = scalar_lea.hbm %s1178_s7, 16 }
  0x3a   :  { %p760_p10 = scmp.ne.s32.totalorder %s1178_s7, %s759_s16  ;;  %p763_p11 = scmp.lt.u32.totalorder %s759_s16, %s1178_s7 }
  0x3c   :  { %p765_p12 = pnand %p763_p11, %p760_p10 }
  0x3e   :  { %768 = shalt.err (!%p765_p12)
}
  0x3f   :  { %s769_s20 = scalar_lea.vmem %s1046_s21, 16  ;;  %s773_s5 = scalar_lea.vmem %s1046_s21, 32 }
  0x40   :  { %p770_p13 = scmp.ne.s32.totalorder %s1046_s21, %s769_s20  ;;  %p774_p0 = scmp.lt.s32.totalorder %s1046_s21, %s1046_s21 }
  0x41   :  { %p775_p1 = scmp.lt.s32.totalorder %s773_s5, %s769_s20 }
  0x43   :  { %p776_p2 = por %p775_p1, %p774_p0 }
  0x45   :  { %p777_p3 = pnand %p776_p2, %p770_p13 }
  0x47   :  { %780 = shalt.err (!%p777_p3)
}
  0x48   :  { %109 = dma.hbm_to_vmem [thread:$0]  %s1178_s7, 16, %s1046_s21, [#allocation15]  }
  0x49   :  { %s957_s25 = smov [#allocation2]   ;;  %s958_s27 = smov [#allocation7]  }
  0x4a   :  { %s27_s26 = sshll.u32 %s957_s25, 4  ;;  %s52_s29 = sshll.u32 %s958_s27, 4  ;;  %s28_s26 = int_to_ptr.vmem [resolvable:$true] %s27_s26  ;;  %s53_s29 = int_to_ptr.vmem [resolvable:$true] %s52_s29 }
  0x4b   :  { %s781_s3 = scalar_lea.hbm %s1171_s0, 256 }
  0x4c   :  { %p782_p4 = scmp.ne.s32.totalorder %s1171_s0, %s781_s3  ;;  %p785_p5 = scmp.lt.u32.totalorder %s781_s3, %s1171_s0 }
  0x4e   :  { %p787_p6 = pnand %p785_p5, %p782_p4 }
  0x50   :  { %790 = shalt.err (!%p787_p6)
}
  0x51   :  { %s791_s7 = scalar_lea.vmem %s28_s26, 256  ;;  %p796_p8 = scmp.lt.s32.totalorder %s28_s26, %s28_s26 }
  0x52   :  { %p792_p7 = scmp.ne.s32.totalorder %s28_s26, %s791_s7  ;;  %p797_p9 = scmp.lt.s32.totalorder %s791_s7, %s791_s7 }
  0x54   :  { %p798_p10 = por %p797_p9, %p796_p8 }
  0x56   :  { %p799_p11 = pnand %p798_p10, %p792_p7 }
  0x58   :  { %802 = shalt.err (!%p799_p11)
}
  0x59   :  { %33 = dma.hbm_to_vmem [thread:$0]  %s1171_s0, 256, %s28_s26, [#allocation3], %s955_s23, %s955_s23, %s956_s24  }
  0x5a   :  { %s803_s14 = scalar_lea.hbm %s1173_s2, 16 }
  0x5b   :  { %p804_p12 = scmp.ne.s32.totalorder %s1173_s2, %s803_s14  ;;  %p807_p13 = scmp.lt.u32.totalorder %s803_s14, %s1173_s2 }
  0x5d   :  { %p809_p0 = pnand %p807_p13, %p804_p12 }
  0x5f   :  { %812 = shalt.err (!%p809_p0)
}
  0x60   :  { %s813_s22 = scalar_lea.vmem %s53_s29, 16  ;;  %s817_s25 = scalar_lea.vmem %s53_s29, 32 }
  0x61   :  { %p814_p1 = scmp.ne.s32.totalorder %s53_s29, %s813_s22  ;;  %p818_p2 = scmp.lt.s32.totalorder %s53_s29, %s53_s29 }
  0x62   :  { %p819_p3 = scmp.lt.s32.totalorder %s817_s25, %s813_s22 }
  0x64   :  { %p820_p4 = por %p819_p3, %p818_p2 }
  0x66   :  { %p821_p5 = pnand %p820_p4, %p814_p1 }
  0x68   :  { %824 = shalt.err (!%p821_p5)
}
  0x69   :  { %55 = dma.hbm_to_vmem [thread:$0]  %s1173_s2, 16, %s53_s29, [#allocation6]  }
  0x6a   :  { %s959_s27 = smov [#allocation10]   ;;  %s960_s11 = smov [#allocation13]  }
  0x6b   :  { %s74_s30 = sshll.u32 %s959_s27, 4  ;;  %s96_s3 = sshll.u32 %s960_s11, 4  ;;  %s75_s30 = int_to_ptr.vmem [resolvable:$true] %s74_s30  ;;  %s97_s3 = int_to_ptr.vmem [resolvable:$true] %s96_s3 }
  0x6c   :  { %s825_s13 = scalar_lea.hbm %s1175_s4, 16 }
  0x6d   :  { %p826_p6 = scmp.ne.s32.totalorder %s1175_s4, %s825_s13  ;;  %p829_p7 = scmp.lt.u32.totalorder %s825_s13, %s1175_s4 }
  0x6f   :  { %p831_p8 = pnand %p829_p7, %p826_p6 }
  0x71   :  { %834 = shalt.err (!%p831_p8)
}
  0x72   :  { %s835_s2 = scalar_lea.vmem %s75_s30, 16  ;;  %s839_s29 = scalar_lea.vmem %s75_s30, 32 }
  0x73   :  { %p836_p9 = scmp.ne.s32.totalorder %s75_s30, %s835_s2  ;;  %p840_p10 = scmp.lt.s32.totalorder %s75_s30, %s75_s30 }
  0x74   :  { %p841_p11 = scmp.lt.s32.totalorder %s839_s29, %s835_s2 }
  0x76   :  { %p842_p12 = por %p841_p11, %p840_p10 }
  0x78   :  { %p843_p13 = pnand %p842_p12, %p836_p9 }
  0x7a   :  { %846 = shalt.err (!%p843_p13)
}
  0x7b   :  { %77 = dma.hbm_to_vmem [thread:$0]  %s1175_s4, 16, %s75_s30, [#allocation9]  }
  0x7c   :  { %s847_s20 = scalar_lea.hbm %s1177_s6, 32 }
  0x7d   :  { %p848_p0 = scmp.ne.s32.totalorder %s1177_s6, %s847_s20  ;;  %p851_p1 = scmp.lt.u32.totalorder %s847_s20, %s1177_s6 }
  0x7f   :  { %p853_p2 = pnand %p851_p1, %p848_p0 }
  0x81   :  { %856 = shalt.err (!%p853_p2)
}
  0x82   :  { %s857_s0 = scalar_lea.vmem %s97_s3, 32  ;;  %p862_p4 = scmp.lt.s32.totalorder %s97_s3, %s97_s3 }
  0x83   :  { %p858_p3 = scmp.ne.s32.totalorder %s97_s3, %s857_s0  ;;  %p863_p5 = scmp.lt.s32.totalorder %s857_s0, %s857_s0 }
  0x85   :  { %p864_p6 = por %p863_p5, %p862_p4 }
  0x87   :  { %p865_p7 = pnand %p864_p6, %p858_p3 }
  0x89   :  { %868 = shalt.err (!%p865_p7)
}
  0x8a   :  { %99 = dma.hbm_to_vmem [thread:$0]  %s1177_s6, 32, %s97_s3, [#allocation12]  }
  0x8b   :  { %s961_s27 = smov [#allocation16]   ;;  %s962_s11 = smov [#allocation17]  }
  0x8c   :  { %s116_s30 = sshll.u32 %s961_s27, 4  ;;  %s126_s28 = sshll.u32 %s962_s11, 4  ;;  %s117_s30 = int_to_ptr.vmem [resolvable:$true] %s116_s30  ;;  %s127_s28 = int_to_ptr.vmem [resolvable:$true] %s126_s28 }
  0x8d   :  { %s869_s15 = scalar_lea.hbm %s1179_s8, 16 }
  0x8e   :  { %p870_p8 = scmp.ne.s32.totalorder %s1179_s8, %s869_s15  ;;  %p873_p9 = scmp.lt.u32.totalorder %s869_s15, %s1179_s8 }
  0x90   :  { %p875_p10 = pnand %p873_p9, %p870_p8 }
  0x92   :  { %878 = shalt.err (!%p875_p10)
}
  0x93   :  { %s879_s6 = scalar_lea.vmem %s117_s30, 16  ;;  %s883_s3 = scalar_lea.vmem %s117_s30, 32 }
  0x94   :  { %p880_p11 = scmp.ne.s32.totalorder %s117_s30, %s879_s6  ;;  %p884_p12 = scmp.lt.s32.totalorder %s117_s30, %s117_s30 }
  0x95   :  { %p885_p13 = scmp.lt.s32.totalorder %s883_s3, %s879_s6 }
  0x97   :  { %p886_p0 = por %p885_p13, %p884_p12 }
  0x99   :  { %p887_p1 = pnand %p886_p0, %p880_p11 }
  0x9b   :  { %890 = shalt.err (!%p887_p1)
}
  0x9c   :  { %119 = dma.hbm_to_vmem [thread:$0]  %s1179_s8, 16, %s117_s30, [#allocation15]  }
  0x9d   :  { %s891_s18 = scalar_lea.hbm %s1180_s9, 16 }
  0x9e   :  { %p892_p2 = scmp.ne.s32.totalorder %s1180_s9, %s891_s18  ;;  %p895_p3 = scmp.lt.u32.totalorder %s891_s18, %s1180_s9 }
  0xa0   :  { %p897_p4 = pnand %p895_p3, %p892_p2 }
  0xa2   :  { %900 = shalt.err (!%p897_p4)
}
  0xa3   :  { %s901_s25 = scalar_lea.vmem %s127_s28, 16  ;;  %s905_s0 = scalar_lea.vmem %s127_s28, 32 }
  0xa4   :  { %p902_p5 = scmp.ne.s32.totalorder %s127_s28, %s901_s25  ;;  %p906_p6 = scmp.lt.s32.totalorder %s127_s28, %s127_s28 }
  0xa5   :  { %p907_p7 = scmp.lt.s32.totalorder %s905_s0, %s901_s25 }
  0xa7   :  { %p908_p8 = por %p907_p7, %p906_p6 }
  0xa9   :  { %p909_p9 = pnand %p908_p8, %p902_p5 }
  0xab   :  { %912 = shalt.err (!%p909_p9)
}
  0xac   :  { %129 = dma.hbm_to_vmem [thread:$0]  %s1180_s9, 16, %s127_s28, [#allocation18]  }
  0xad   :  { %935 = dma.done.wait [#allocation3], 256  }
  0xae   :  { %936 = vsyncadd [#allocation3], 4294967040 }
  0xaf   :  { %937 = dma.done.wait [#allocation6], 208  }
  0xb0   :  { %938 = vsyncadd [#allocation6], 4294967088 }
  0xb1   :  { %939 = dma.done.wait [#allocation9], 1040  }
  0xb2   :  { %940 = vsyncadd [#allocation9], 4294966256 }
  0xb3   :  { %941 = dma.done.wait [#allocation12], 2080  }
  0xb4   :  { %942 = vsyncadd [#allocation12], 4294965216 }
  0xb5   :  { %943 = dma.done.wait [#allocation15], 32  }
  0xb6   :  { %944 = vsyncadd [#allocation15], 4294967264 }
  0xb7   :  { %945 = dma.done.wait [#allocation18], 16  }
  0xb8   :  { %946 = vsyncadd [#allocation18], 4294967280  ;;  %v963_v0 = vmov 0.0   ;;  %vm964_vm0 = vmmov 0   ;;  %v659_v1 = vld [vmem:[#allocation5] sm:$0xff]   ;;  %vm187_vm1 = vcmask 1043456   ;;  %v368_v52 = vlaneseq }
  0xb9   :  { %613 = vmatprep.subr.bf16.mxu0 %v963_v0  ;;  %617 = vmatprep.mubr.msk.bf16.mxu0 %vm964_vm0, %v963_v0  ;;  %v660_v2 = vld [vmem:[#allocation5 + $0x8] ss:$0 sps:$4 sm:$0xff]   ;;  %v161_v3 = vld [vmem:[#allocation2] sm:$0xff]  ;;  %v162_v4 = vld [vmem:[#allocation2 + $0x8] sm:$0xff]  ;;  %vm183_vm2 = vcmask 195584   ;;  %v965_v41 = vmov 0  }
  0xba   :  { %621 = vmatprep.subr.bf16.mxu1 %v963_v0  ;;  %637 = vmatprep.mubr.msk.bf16.mxu1 %vm964_vm0, %v963_v0  ;;  %v189_v5 = vsel %vm187_vm1, %v660_v2, 0  ;;  %v661_v6 = vld [vmem:[#allocation8] sm:$0xff]   ;;  %v163_v7 = vpack.c.bf16 %v162_v4, %v161_v3  ;;  %v662_v8 = vld [vmem:[#allocation8 + $0x8] sm:$0xff]   ;;  %v663_v9 = vld [vmem:[#allocation8 + $0x10] sm:$0xff]   ;;  %v369_v53 = vshrl.u32 %v368_v52, 7  ;;  %s966_s9 = smov [#allocation19]  }
  0xbb   :  { %614 = vmatpush3.bf16.msra.mxu0 %v659_v1  ;;  %622 = vmatpush3.bf16.msra.mxu1 %v661_v6  ;;  %v664_v10 = vld [vmem:[#allocation8 + $0x18] sm:$0xff]   ;;  %v665_v11 = vld [vmem:[#allocation8 + $0x20] sm:$0xff]   ;;  %v666_v12 = vld [vmem:[#allocation8 + $0x28] sm:$0xff]   ;;  %s552_s26 = sshll.u32 %s966_s9, 4  ;;  %s553_s26 = int_to_ptr.vmem [resolvable:$true] %s552_s26 }
  0xbc   :  { %615 = vmatprep.subr.bf16.mxu0 %v963_v0  ;;  %623 = vmatprep.subr.bf16.mxu1 %v963_v0  ;;  %v667_v13 = vld [vmem:[#allocation8 + $0x30] sm:$0xff]   ;;  %v668_v14 = vld [vmem:[#allocation8 + $0x38] sm:$0xff]   ;;  %v669_v15 = vld [vmem:[#allocation11] ss:$8 sps:$4 sm:$0xff]   ;;  %v370_v54 = vsub.s32 0, %v369_v53  ;;  %v374_v56 = vsub.s32 1, %v369_v53  ;;  %p918_p11 = scmp.lt.s32.totalorder %s553_s26, %s553_s26 }
  0xbd   :  { %v671_v16 = vld [vmem:[#allocation11 + $0x4] ss:$8 sps:$4 sm:$0xff]   ;;  %v674_v17 = vld [vmem:[#allocation11 + $0x14] ss:$8 sps:$4 sm:$0xff]   ;;  %v672_v18 = vld [vmem:[#allocation11 + $0x10] ss:$8 sps:$4 sm:$0xff]  }
  0xbe   :  { %v677_v19 = vld [vmem:[#allocation11 + $0x24] ss:$8 sps:$4 sm:$0xff]   ;;  %v675_v20 = vld [vmem:[#allocation11 + $0x20] ss:$8 sps:$4 sm:$0xff]   ;;  %v680_v21 = vld [vmem:[#allocation11 + $0x34] ss:$8 sps:$4 sm:$0xff]  }
  0xbf   :  { %616 = vmatpush3.bf16.msra.mxu0 %v189_v5  ;;  %624 = vmatpush3.bf16.msra.mxu1 %v662_v8  ;;  %v678_v22 = vld [vmem:[#allocation11 + $0x30] ss:$8 sps:$4 sm:$0xff]   ;;  %v683_v23 = vld [vmem:[#allocation11 + $0x44] ss:$8 sps:$4 sm:$0xff]   ;;  %v681_v24 = vld [vmem:[#allocation11 + $0x40] ss:$8 sps:$4 sm:$0xff]  }
  0xc0   :  { %625 = vmatprep.subr.bf16.mxu1 %v963_v0  ;;  %458 = vmatprep.subr.bf16.mxu0 %v671_v16  ;;  %v686_v25 = vld [vmem:[#allocation11 + $0x54] ss:$8 sps:$4 sm:$0xff]   ;;  %v684_v26 = vld [vmem:[#allocation11 + $0x50] ss:$8 sps:$4 sm:$0xff]   ;;  %v689_v37 = vld [vmem:[#allocation11 + $0x64] ss:$8 sps:$4 sm:$0xff]  }
  0xc1   :  { %v569_v27 = vld [vmem:[#allocation7] ss:$0 sm:$0xff]  ;;  %v687_v38 = vld [vmem:[#allocation11 + $0x60] ss:$8 sps:$4 sm:$0xff]   ;;  %v690_v40 = vld [vmem:[#allocation11 + $0x70] ss:$8 sps:$4 sm:$0xff]  }
  0xc2   :  { %618 = vmatmul.mubr.msk.bf16.vlgmr.msra.gmra.mrb[0].mxu0 %vm183_vm2, %v163_v7  ;;  %v692_v39 = vld [vmem:[#allocation11 + $0x74] ss:$8 sps:$4 sm:$0xff]   ;;  %v366_v55 = vld [vmem:[#allocation13] sm:$0x3]  ;;  %v599_v4 = vld [vmem:[#allocation16] ss:$0 sm:$0xff] }
  0xc3   :  { %626 = vmatpush3.bf16.msra.mxu1 %v663_v9  ;;  %459 = vmatpush1.bf16.msra.mxu0 %v669_v15  ;;  %v573_v42 = vld [vmem:[#allocation10] ss:$0 sm:$0xff]  ;;  %v371_v57 = vrot.slane %v366_v55, %v370_v54  ;;  %v375_v58 = vrot.slane %v366_v55, %v374_v56  ;;  %v600_v15 = vld [vmem:[#allocation17] ss:$0 sm:$0xff]  ;;  %s913_s27 = scalar_lea.vmem %s553_s26, 256 }
  0xc4   :  { %627 = vmatprep.subr.bf16.mxu1 %v963_v0  ;;  %460 = vmatprep.subr.bf16.mxu0 %v674_v17  ;;  %p914_p10 = scmp.ne.s32.totalorder %s553_s26, %s913_s27  ;;  %p919_p12 = scmp.lt.s32.totalorder %s913_s27, %s913_s27 }
  0xc5   :  { %490 = vmatprep.mubr.bf16.mxu0 %v965_v41 }
  0xc6   :  { %p920_p13 = por %p919_p12, %p918_p11 }
  0xc7   :  { %628 = vmatpush3.bf16.msra.mxu1 %v664_v10  ;;  %461 = vmatpush1.bf16.msra.mxu0 %v672_v18 }
  0xc8   :  { %629 = vmatprep.subr.bf16.mxu1 %v963_v0  ;;  %462 = vmatprep.subr.bf16.mxu0 %v677_v19  ;;  %p921_p0 = pnand %p920_p13, %p914_p10 }
  0xcb   :  { %630 = vmatpush3.bf16.msra.mxu1 %v665_v11  ;;  %463 = vmatpush1.bf16.msra.mxu0 %v675_v20 }
  0xcc   :  { %631 = vmatprep.subr.bf16.mxu1 %v963_v0  ;;  %464 = vmatprep.subr.bf16.mxu0 %v680_v21 }
  0xcf   :  { %632 = vmatpush3.bf16.msra.mxu1 %v666_v12  ;;  %465 = vmatpush1.bf16.msra.mxu0 %v678_v22 }
  0xd0   :  { %633 = vmatprep.subr.bf16.mxu1 %v963_v0  ;;  %466 = vmatprep.subr.bf16.mxu0 %v683_v23 }
  0xd3   :  { %634 = vmatpush3.bf16.msra.mxu1 %v667_v13  ;;  %467 = vmatpush1.bf16.msra.mxu0 %v681_v24  ;;  %v532_v13 = vand.u32 127, %v368_v52 }
  0xd4   :  { %635 = vmatprep.subr.bf16.mxu1 %v963_v0  ;;  %468 = vmatprep.subr.bf16.mxu0 %v686_v25  ;;  %v598_v0 = vld [vmem:[#allocation14] ss:$0 sm:$0xff] }
  0xd5   :  { %vm533_vm3 = vcmp.lt.s32.totalorder %v532_v13, 64 }
  0xd7   :  { %636 = vmatpush3.bf16.msra.mxu1 %v668_v14  ;;  %469 = vmatpush1.bf16.msra.mxu0 %v684_v26 }
  0xd8   :  { %470 = vmatprep.subr.bf16.mxu0 %v689_v37 }
  0xdb   :  { %471 = vmatpush1.bf16.msra.mxu0 %v687_v38 }
  0xdc   :  { %472 = vmatprep.subr.bf16.mxu0 %v692_v39 }
  0xdf   :  { %473 = vmatpush1.bf16.msra.mxu0 %v690_v40 }
 0x195   :  { %v225_v28 = vpop.f32.mrb[0].mxu0 }
 0x196   :  { %v226_v29 = vadd.f32 %v569_v27, %v225_v28  ;;  %v619_v30 = vpop.f32.mrb[1].mxu0 }
 0x197   :  { %v228_v31 = vpop.f32.mrb[2].mxu0 }
 0x198   :  { %v229_v32 = vadd.f32 %v569_v27, %v228_v31  ;;  %v620_v33 = vpop.f32.mrb[3].mxu0  ;;  %v232_v34 = vmax.f32 %v226_v29, 0.0 }
 0x19a   :  { %v233_v35 = vmax.f32 %v229_v32, 0.0 }
 0x19c   :  { %v234_v36 = vpack.c.bf16 %v233_v35, %v232_v34 }
 0x19e   :  { %638 = vmatmul.mubr.bf16.vlgmr.msra.gmra.mrb[0].mxu1 %v234_v36 }
 0x271   :  { %v340_v43 = vpop.f32.mrb[0].mxu1 }
 0x272   :  { %v341_v44 = vadd.f32 %v573_v42, %v340_v43  ;;  %v639_v45 = vpop.f32.mrb[1].mxu1 }
 0x273   :  { %v343_v46 = vpop.f32.mrb[2].mxu1 }
 0x274   :  { %v344_v47 = vadd.f32 %v573_v42, %v343_v46  ;;  %v640_v48 = vpop.f32.mrb[3].mxu1  ;;  %v347_v49 = vmax.f32 %v341_v44, 0.0 }
 0x276   :  { %v348_v50 = vmax.f32 %v344_v47, 0.0 }
 0x278   :  { %v349_v51 = vpack.c.bf16 %v348_v50, %v347_v49 }
 0x27a   :  { %491 = vmatmul.mubr.bf16.vlgmr.msra.gmra.mrb[4].mxu0 %v349_v51 }
 0x34d   :  { %v492_v59 = vpop.f32.mrb[4].mxu0 }
 0x34e   :  { %v493_v60 = vadd.f32 %v492_v59, %v371_v57  ;;  %v494_v61 = vpop.f32.mrb[5].mxu0 }
 0x34f   :  { %v495_v62 = vadd.f32 %v494_v61, %v375_v58  ;;  %v496_v63 = vpop.f32.mrb[6].mxu0 }
 0x350   :  { %v501_v1 = vmax.f32 %v493_v60, 0.0  ;;  %v497_v2 = vadd.f32 %v496_v63, %v371_v57  ;;  %v498_v3 = vpop.f32.mrb[7].mxu0 }
 0x351   :  { %v502_v5 = vmax.f32 %v495_v62, 0.0  ;;  %v499_v6 = vadd.f32 %v498_v3, %v375_v58 }
 0x352   :  { %v503_v7 = vmax.f32 %v497_v2, 0.0  ;;  %v512_v8 = vmul.f32 %v598_v0, %v501_v1 }
 0x353   :  { %v504_v9 = vmax.f32 %v499_v6, 0.0  ;;  %v525_v10 = vmul.f32 %v599_v4, %v502_v5 }
 0x354   :  { %514 = vadd.xlane.f32.xlu0 %v512_v8  ;;  %v513_v11 = vmul.f32 %v598_v0, %v503_v7 }
 0x355   :  { %527 = vadd.xlane.f32.xlu1 %v525_v10  ;;  %v526_v12 = vmul.f32 %v599_v4, %v504_v9 }
 0x358   :  { %516 = vadd.xlane.f32.xlu0 %v513_v11 }
 0x359   :  { %529 = vadd.xlane.f32.xlu1 %v526_v12 }
 0x3e1   :  { %v515_v14 = vpop.xlane.xlu0 %514 }
 0x3e2   :  { %v528_v16 = vpop.xlane.xlu1 %527 }
 0x3e3   :  { %v534_v17 = vsel %vm533_vm3, %v515_v14, %v528_v16 }
 0x3e4   :  { %v543_v18 = vadd.f32 %v600_v15, %v534_v17 }
 0x3e5   :  { %v517_v19 = vpop.xlane.xlu0 %516 }
 0x3e6   :  { %545 = vst [vmem:[#allocation19] sm:$0xff] %v543_v18  ;;  %v530_v20 = vpop.xlane.xlu1 %529 }
 0x3e7   :  { %v535_v21 = vsel %vm533_vm3, %v517_v19, %v530_v20 }
 0x3e8   :  { %v544_v22 = vadd.f32 %v600_v15, %v535_v21 }
 0x3ea   :  { %546 = vst [vmem:[#allocation19 + $0x8] sm:$0xff] %v544_v22 }
 0x3eb   :  { %924 = shalt.err (!%p921_p0)
}
 0x3ec   :  { %s925_s28 = scalar_lea.hbm %s1181_s10, 256 }
 0x3ed   :  { %p926_p1 = scmp.ne.s32.totalorder %s1181_s10, %s925_s28  ;;  %p929_p2 = scmp.lt.u32.totalorder %s925_s28, %s1181_s10 }
 0x3ef   :  { %p931_p3 = pnand %p929_p2, %p926_p1 }
 0x3f1   :  { %934 = shalt.err (!%p931_p3)
}
 0x3f2   :  { %558 = dma.vmem_to_hbm [thread:$0]  %s553_s26, 256, %s1181_s10, [#allocation4], %s955_s23, %s955_s23, %s956_s24  }
 0x3f3   :  { %947 = dma.done.wait [#allocation4], 256  }
 0x3f4   :  { %948 = vsyncadd [#allocation4], 4294967040 }
 0x3f5   :  { %562 = vsyncpa [#allocation3], 1 }
 0x3f6   :  { %563 = vsyncpa [#allocation6], 1 }
 0x3f7   :  { %564 = vsyncpa [#allocation9], 1 }
 0x3f8   :  { %565 = vsyncpa [#allocation12], 1 }
 0x3f9   :  { %566 = vsyncpa [#allocation15], 1 }
 0x3fa   :  { %567 = vsyncpa [#allocation18], 1 }
 0x3fb   :  { %568 = vsyncpa [#allocation4], 1 }

// kernel: _critic_twin_slab.1
= control target key start
LH: loop header
LB: loop body
LE: loop exit
PB: predicated region body
PF: predicated region fallthrough
CT: control target
= control target key end

     0   :  { %15 = vsyncpa [#allocation3], 0  ;;  %s1171_s0 = inlined_call_operand.hbm [shape: f32[16,24], index: 0, kind: input, shape index: {}]   ;;  %s1172_s1 = inlined_call_operand.hbm [shape: bf16[24,128], index: 1, kind: input, shape index: {}]   ;;  %s1173_s2 = inlined_call_operand.hbm [shape: f32[1,128], index: 2, kind: input, shape index: {}]   ;;  %s1174_s3 = inlined_call_operand.hbm [shape: bf16[128,128], index: 3, kind: input, shape index: {}]   ;;  %s1175_s4 = inlined_call_operand.hbm [shape: f32[1,128], index: 4, kind: input, shape index: {}]   ;;  %s1176_s5 = inlined_call_operand.hbm [shape: bf16[128,256], index: 5, kind: input, shape index: {}]   ;;  %s1177_s6 = inlined_call_operand.hbm [shape: f32[1,256], index: 6, kind: input, shape index: {}]   ;;  %s1178_s7 = inlined_call_operand.hbm [shape: f32[1,128], index: 7, kind: input, shape index: {}]   ;;  %s1179_s8 = inlined_call_operand.hbm [shape: f32[1,128], index: 8, kind: input, shape index: {}]   ;;  %s1180_s9 = inlined_call_operand.hbm [shape: f32[1,128], index: 9, kind: input, shape index: {}]   ;;  %s1181_s10 = inlined_call_operand.hbm [shape: f32[16,128], index: 10, kind: output, shape index: {}]  }
   0x1   :  { %16 = vsyncpa [#allocation6], 0 }
   0x2   :  { %17 = vsyncpa [#allocation9], 0 }
   0x3   :  { %18 = vsyncpa [#allocation12], 0 }
   0x4   :  { %19 = vsyncpa [#allocation15], 0 }
   0x5   :  { %20 = vsyncpa [#allocation18], 0 }
   0x6   :  { %21 = vsyncpa [#allocation4], 0  ;;  %s949_s13 = smov [#allocation5]   ;;  %s693_s17 = scalar_lea.hbm %s1172_s1, 192 }
   0x7   :  { %s39_s14 = sshll.u32 %s949_s13, 4  ;;  %p694_p0 = scmp.ne.s32.totalorder %s1172_s1, %s693_s17  ;;  %s40_s14 = int_to_ptr.vmem [resolvable:$true] %s39_s14 }
   0x8   :  { %p697_p1 = scmp.lt.u32.totalorder %s693_s17, %s1172_s1 }
   0xa   :  { %p699_p2 = pnand %p697_p1, %p694_p0 }
   0xc   :  { %702 = shalt.err (!%p699_p2)
}
   0xd   :  { %s703_s22 = scalar_lea.vmem %s40_s14, 192  ;;  %p708_p4 = scmp.lt.s32.totalorder %s40_s14, %s40_s14 }
   0xe   :  { %p704_p3 = scmp.ne.s32.totalorder %s40_s14, %s703_s22  ;;  %p709_p5 = scmp.lt.s32.totalorder %s703_s22, %s703_s22 }
  0x10   :  { %p710_p6 = por %p709_p5, %p708_p4 }
  0x12   :  { %p711_p7 = pnand %p710_p6, %p704_p3 }
  0x14   :  { %714 = shalt.err (!%p711_p7)
}
  0x15   :  { %s950_s23 = smov 64   ;;  %s951_s24 = smov 4  }
  0x16   :  { %45 = dma.hbm_to_vmem [thread:$0]  %s1172_s1, 192, %s40_s14, [#allocation6], %s950_s23, %s950_s23, %s951_s24  }
  0x17   :  { %s952_s27 = smov [#allocation8]   ;;  %s715_s11 = scalar_lea.hbm %s1174_s3, 1024 }
  0x18   :  { %s61_s28 = sshll.u32 %s952_s27, 4  ;;  %p716_p8 = scmp.ne.s32.totalorder %s1174_s3, %s715_s11  ;;  %s62_s28 = int_to_ptr.vmem [resolvable:$true] %s61_s28 }
  0x19   :  { %p719_p9 = scmp.lt.u32.totalorder %s715_s11, %s1174_s3 }
  0x1b   :  { %p721_p10 = pnand %p719_p9, %p716_p8 }
  0x1d   :  { %724 = shalt.err (!%p721_p10)
}
  0x1e   :  { %s725_s17 = scalar_lea.vmem %s62_s28, 1024  ;;  %p730_p12 = scmp.lt.s32.totalorder %s62_s28, %s62_s28 }
  0x1f   :  { %p726_p11 = scmp.ne.s32.totalorder %s62_s28, %s725_s17  ;;  %p731_p13 = scmp.lt.s32.totalorder %s725_s17, %s725_s17 }
  0x21   :  { %p732_p0 = por %p731_p13, %p730_p12 }
  0x23   :  { %p733_p1 = pnand %p732_p0, %p726_p11 }
  0x25   :  { %736 = shalt.err (!%p733_p1)
}
  0x26   :  { %67 = dma.hbm_to_vmem [thread:$0]  %s1174_s3, 1024, %s62_s28, [#allocation9], %s950_s23, %s950_s23, %s951_s24  }
  0x27   :  { %s953_s18 = smov [#allocation11]   ;;  %s954_s20 = smov [#allocation14]  }
  0x28   :  { %s83_s19 = sshll.u32 %s953_s18, 4  ;;  %s106_s21 = sshll.u32 %s954_s20, 4  ;;  %s84_s19 = int_to_ptr.vmem [resolvable:$true] %s83_s19  ;;  %s1046_s21 = int_to_ptr.vmem [resolvable:$true] %s106_s21 }
  0x29   :  { %s737_s26 = scalar_lea.hbm %s1176_s5, 2048 }
  0x2a   :  { %p738_p2 = scmp.ne.s32.totalorder %s1176_s5, %s737_s26  ;;  %p741_p3 = scmp.lt.u32.totalorder %s737_s26, %s1176_s5 }
  0x2c   :  { %p743_p4 = pnand %p741_p3, %p738_p2 }
  0x2e   :  { %746 = shalt.err (!%p743_p4)
}
  0x2f   :  { %s747_s3 = scalar_lea.vmem %s84_s19, 2048  ;;  %p752_p6 = scmp.lt.s32.totalorder %s84_s19, %s84_s19 }
  0x30   :  { %p748_p5 = scmp.ne.s32.totalorder %s84_s19, %s747_s3  ;;  %p753_p7 = scmp.lt.s32.totalorder %s747_s3, %s747_s3 }
  0x32   :  { %p754_p8 = por %p753_p7, %p752_p6 }
  0x34   :  { %p755_p9 = pnand %p754_p8, %p748_p5 }
  0x36   :  { %758 = shalt.err (!%p755_p9)
}
  0x37   :  { %s955_s23 = smov 128   ;;  %s956_s24 = smov 8  }
  0x38   :  { %89 = dma.hbm_to_vmem [thread:$0]  %s1176_s5, 2048, %s84_s19, [#allocation12], %s955_s23, %s955_s23, %s956_s24  }
  0x39   :  { %s759_s16 = scalar_lea.hbm %s1178_s7, 16 }
  0x3a   :  { %p760_p10 = scmp.ne.s32.totalorder %s1178_s7, %s759_s16  ;;  %p763_p11 = scmp.lt.u32.totalorder %s759_s16, %s1178_s7 }
  0x3c   :  { %p765_p12 = pnand %p763_p11, %p760_p10 }
  0x3e   :  { %768 = shalt.err (!%p765_p12)
}
  0x3f   :  { %s769_s20 = scalar_lea.vmem %s1046_s21, 16  ;;  %s773_s5 = scalar_lea.vmem %s1046_s21, 32 }
  0x40   :  { %p770_p13 = scmp.ne.s32.totalorder %s1046_s21, %s769_s20  ;;  %p774_p0 = scmp.lt.s32.totalorder %s1046_s21, %s1046_s21 }
  0x41   :  { %p775_p1 = scmp.lt.s32.totalorder %s773_s5, %s769_s20 }
  0x43   :  { %p776_p2 = por %p775_p1, %p774_p0 }
  0x45   :  { %p777_p3 = pnand %p776_p2, %p770_p13 }
  0x47   :  { %780 = shalt.err (!%p777_p3)
}
  0x48   :  { %109 = dma.hbm_to_vmem [thread:$0]  %s1178_s7, 16, %s1046_s21, [#allocation15]  }
  0x49   :  { %s957_s25 = smov [#allocation2]   ;;  %s958_s27 = smov [#allocation7]  }
  0x4a   :  { %s27_s26 = sshll.u32 %s957_s25, 4  ;;  %s52_s29 = sshll.u32 %s958_s27, 4  ;;  %s28_s26 = int_to_ptr.vmem [resolvable:$true] %s27_s26  ;;  %s53_s29 = int_to_ptr.vmem [resolvable:$true] %s52_s29 }
  0x4b   :  { %s781_s3 = scalar_lea.hbm %s1171_s0, 256 }
  0x4c   :  { %p782_p4 = scmp.ne.s32.totalorder %s1171_s0, %s781_s3  ;;  %p785_p5 = scmp.lt.u32.totalorder %s781_s3, %s1171_s0 }
  0x4e   :  { %p787_p6 = pnand %p785_p5, %p782_p4 }
  0x50   :  { %790 = shalt.err (!%p787_p6)
}
  0x51   :  { %s791_s7 = scalar_lea.vmem %s28_s26, 256  ;;  %p796_p8 = scmp.lt.s32.totalorder %s28_s26, %s28_s26 }
  0x52   :  { %p792_p7 = scmp.ne.s32.totalorder %s28_s26, %s791_s7  ;;  %p797_p9 = scmp.lt.s32.totalorder %s791_s7, %s791_s7 }
  0x54   :  { %p798_p10 = por %p797_p9, %p796_p8 }
  0x56   :  { %p799_p11 = pnand %p798_p10, %p792_p7 }
  0x58   :  { %802 = shalt.err (!%p799_p11)
}
  0x59   :  { %33 = dma.hbm_to_vmem [thread:$0]  %s1171_s0, 256, %s28_s26, [#allocation3], %s955_s23, %s955_s23, %s956_s24  }
  0x5a   :  { %s803_s14 = scalar_lea.hbm %s1173_s2, 16 }
  0x5b   :  { %p804_p12 = scmp.ne.s32.totalorder %s1173_s2, %s803_s14  ;;  %p807_p13 = scmp.lt.u32.totalorder %s803_s14, %s1173_s2 }
  0x5d   :  { %p809_p0 = pnand %p807_p13, %p804_p12 }
  0x5f   :  { %812 = shalt.err (!%p809_p0)
}
  0x60   :  { %s813_s22 = scalar_lea.vmem %s53_s29, 16  ;;  %s817_s25 = scalar_lea.vmem %s53_s29, 32 }
  0x61   :  { %p814_p1 = scmp.ne.s32.totalorder %s53_s29, %s813_s22  ;;  %p818_p2 = scmp.lt.s32.totalorder %s53_s29, %s53_s29 }
  0x62   :  { %p819_p3 = scmp.lt.s32.totalorder %s817_s25, %s813_s22 }
  0x64   :  { %p820_p4 = por %p819_p3, %p818_p2 }
  0x66   :  { %p821_p5 = pnand %p820_p4, %p814_p1 }
  0x68   :  { %824 = shalt.err (!%p821_p5)
}
  0x69   :  { %55 = dma.hbm_to_vmem [thread:$0]  %s1173_s2, 16, %s53_s29, [#allocation6]  }
  0x6a   :  { %s959_s27 = smov [#allocation10]   ;;  %s960_s11 = smov [#allocation13]  }
  0x6b   :  { %s74_s30 = sshll.u32 %s959_s27, 4  ;;  %s96_s3 = sshll.u32 %s960_s11, 4  ;;  %s75_s30 = int_to_ptr.vmem [resolvable:$true] %s74_s30  ;;  %s97_s3 = int_to_ptr.vmem [resolvable:$true] %s96_s3 }
  0x6c   :  { %s825_s13 = scalar_lea.hbm %s1175_s4, 16 }
  0x6d   :  { %p826_p6 = scmp.ne.s32.totalorder %s1175_s4, %s825_s13  ;;  %p829_p7 = scmp.lt.u32.totalorder %s825_s13, %s1175_s4 }
  0x6f   :  { %p831_p8 = pnand %p829_p7, %p826_p6 }
  0x71   :  { %834 = shalt.err (!%p831_p8)
}
  0x72   :  { %s835_s2 = scalar_lea.vmem %s75_s30, 16  ;;  %s839_s29 = scalar_lea.vmem %s75_s30, 32 }
  0x73   :  { %p836_p9 = scmp.ne.s32.totalorder %s75_s30, %s835_s2  ;;  %p840_p10 = scmp.lt.s32.totalorder %s75_s30, %s75_s30 }
  0x74   :  { %p841_p11 = scmp.lt.s32.totalorder %s839_s29, %s835_s2 }
  0x76   :  { %p842_p12 = por %p841_p11, %p840_p10 }
  0x78   :  { %p843_p13 = pnand %p842_p12, %p836_p9 }
  0x7a   :  { %846 = shalt.err (!%p843_p13)
}
  0x7b   :  { %77 = dma.hbm_to_vmem [thread:$0]  %s1175_s4, 16, %s75_s30, [#allocation9]  }
  0x7c   :  { %s847_s20 = scalar_lea.hbm %s1177_s6, 32 }
  0x7d   :  { %p848_p0 = scmp.ne.s32.totalorder %s1177_s6, %s847_s20  ;;  %p851_p1 = scmp.lt.u32.totalorder %s847_s20, %s1177_s6 }
  0x7f   :  { %p853_p2 = pnand %p851_p1, %p848_p0 }
  0x81   :  { %856 = shalt.err (!%p853_p2)
}
  0x82   :  { %s857_s0 = scalar_lea.vmem %s97_s3, 32  ;;  %p862_p4 = scmp.lt.s32.totalorder %s97_s3, %s97_s3 }
  0x83   :  { %p858_p3 = scmp.ne.s32.totalorder %s97_s3, %s857_s0  ;;  %p863_p5 = scmp.lt.s32.totalorder %s857_s0, %s857_s0 }
  0x85   :  { %p864_p6 = por %p863_p5, %p862_p4 }
  0x87   :  { %p865_p7 = pnand %p864_p6, %p858_p3 }
  0x89   :  { %868 = shalt.err (!%p865_p7)
}
  0x8a   :  { %99 = dma.hbm_to_vmem [thread:$0]  %s1177_s6, 32, %s97_s3, [#allocation12]  }
  0x8b   :  { %s961_s27 = smov [#allocation16]   ;;  %s962_s11 = smov [#allocation17]  }
  0x8c   :  { %s116_s30 = sshll.u32 %s961_s27, 4  ;;  %s126_s28 = sshll.u32 %s962_s11, 4  ;;  %s117_s30 = int_to_ptr.vmem [resolvable:$true] %s116_s30  ;;  %s127_s28 = int_to_ptr.vmem [resolvable:$true] %s126_s28 }
  0x8d   :  { %s869_s15 = scalar_lea.hbm %s1179_s8, 16 }
  0x8e   :  { %p870_p8 = scmp.ne.s32.totalorder %s1179_s8, %s869_s15  ;;  %p873_p9 = scmp.lt.u32.totalorder %s869_s15, %s1179_s8 }
  0x90   :  { %p875_p10 = pnand %p873_p9, %p870_p8 }
  0x92   :  { %878 = shalt.err (!%p875_p10)
}
  0x93   :  { %s879_s6 = scalar_lea.vmem %s117_s30, 16  ;;  %s883_s3 = scalar_lea.vmem %s117_s30, 32 }
  0x94   :  { %p880_p11 = scmp.ne.s32.totalorder %s117_s30, %s879_s6  ;;  %p884_p12 = scmp.lt.s32.totalorder %s117_s30, %s117_s30 }
  0x95   :  { %p885_p13 = scmp.lt.s32.totalorder %s883_s3, %s879_s6 }
  0x97   :  { %p886_p0 = por %p885_p13, %p884_p12 }
  0x99   :  { %p887_p1 = pnand %p886_p0, %p880_p11 }
  0x9b   :  { %890 = shalt.err (!%p887_p1)
}
  0x9c   :  { %119 = dma.hbm_to_vmem [thread:$0]  %s1179_s8, 16, %s117_s30, [#allocation15]  }
  0x9d   :  { %s891_s18 = scalar_lea.hbm %s1180_s9, 16 }
  0x9e   :  { %p892_p2 = scmp.ne.s32.totalorder %s1180_s9, %s891_s18  ;;  %p895_p3 = scmp.lt.u32.totalorder %s891_s18, %s1180_s9 }
  0xa0   :  { %p897_p4 = pnand %p895_p3, %p892_p2 }
  0xa2   :  { %900 = shalt.err (!%p897_p4)
}
  0xa3   :  { %s901_s25 = scalar_lea.vmem %s127_s28, 16  ;;  %s905_s0 = scalar_lea.vmem %s127_s28, 32 }
  0xa4   :  { %p902_p5 = scmp.ne.s32.totalorder %s127_s28, %s901_s25  ;;  %p906_p6 = scmp.lt.s32.totalorder %s127_s28, %s127_s28 }
  0xa5   :  { %p907_p7 = scmp.lt.s32.totalorder %s905_s0, %s901_s25 }
  0xa7   :  { %p908_p8 = por %p907_p7, %p906_p6 }
  0xa9   :  { %p909_p9 = pnand %p908_p8, %p902_p5 }
  0xab   :  { %912 = shalt.err (!%p909_p9)
}
  0xac   :  { %129 = dma.hbm_to_vmem [thread:$0]  %s1180_s9, 16, %s127_s28, [#allocation18]  }
  0xad   :  { %935 = dma.done.wait [#allocation3], 256  }
  0xae   :  { %936 = vsyncadd [#allocation3], 4294967040 }
  0xaf   :  { %937 = dma.done.wait [#allocation6], 208  }
  0xb0   :  { %938 = vsyncadd [#allocation6], 4294967088 }
  0xb1   :  { %939 = dma.done.wait [#allocation9], 1040  }
  0xb2   :  { %940 = vsyncadd [#allocation9], 4294966256 }
  0xb3   :  { %941 = dma.done.wait [#allocation12], 2080  }
  0xb4   :  { %942 = vsyncadd [#allocation12], 4294965216 }
  0xb5   :  { %943 = dma.done.wait [#allocation15], 32  }
  0xb6   :  { %944 = vsyncadd [#allocation15], 4294967264 }
  0xb7   :  { %945 = dma.done.wait [#allocation18], 16  }
  0xb8   :  { %946 = vsyncadd [#allocation18], 4294967280  ;;  %v963_v0 = vmov 0.0   ;;  %vm964_vm0 = vmmov 0   ;;  %v659_v1 = vld [vmem:[#allocation5] sm:$0xff]   ;;  %vm187_vm1 = vcmask 1043456   ;;  %v368_v52 = vlaneseq }
  0xb9   :  { %613 = vmatprep.subr.bf16.mxu0 %v963_v0  ;;  %617 = vmatprep.mubr.msk.bf16.mxu0 %vm964_vm0, %v963_v0  ;;  %v660_v2 = vld [vmem:[#allocation5 + $0x8] ss:$0 sps:$4 sm:$0xff]   ;;  %v161_v3 = vld [vmem:[#allocation2] sm:$0xff]  ;;  %v162_v4 = vld [vmem:[#allocation2 + $0x8] sm:$0xff]  ;;  %vm183_vm2 = vcmask 195584   ;;  %v965_v41 = vmov 0  }
  0xba   :  { %621 = vmatprep.subr.bf16.mxu1 %v963_v0  ;;  %637 = vmatprep.mubr.msk.bf16.mxu1 %vm964_vm0, %v963_v0  ;;  %v189_v5 = vsel %vm187_vm1, %v660_v2, 0  ;;  %v661_v6 = vld [vmem:[#allocation8] sm:$0xff]   ;;  %v163_v7 = vpack.c.bf16 %v162_v4, %v161_v3  ;;  %v662_v8 = vld [vmem:[#allocation8 + $0x8] sm:$0xff]   ;;  %v663_v9 = vld [vmem:[#allocation8 + $0x10] sm:$0xff]   ;;  %v369_v53 = vshrl.u32 %v368_v52, 7  ;;  %s966_s9 = smov [#allocation19]  }
  0xbb   :  { %614 = vmatpush3.bf16.msra.mxu0 %v659_v1  ;;  %622 = vmatpush3.bf16.msra.mxu1 %v661_v6  ;;  %v664_v10 = vld [vmem:[#allocation8 + $0x18] sm:$0xff]   ;;  %v665_v11 = vld [vmem:[#allocation8 + $0x20] sm:$0xff]   ;;  %v666_v12 = vld [vmem:[#allocation8 + $0x28] sm:$0xff]   ;;  %s552_s26 = sshll.u32 %s966_s9, 4  ;;  %s553_s26 = int_to_ptr.vmem [resolvable:$true] %s552_s26 }
  0xbc   :  { %615 = vmatprep.subr.bf16.mxu0 %v963_v0  ;;  %623 = vmatprep.subr.bf16.mxu1 %v963_v0  ;;  %v667_v13 = vld [vmem:[#allocation8 + $0x30] sm:$0xff]   ;;  %v668_v14 = vld [vmem:[#allocation8 + $0x38] sm:$0xff]   ;;  %v669_v15 = vld [vmem:[#allocation11] ss:$8 sps:$4 sm:$0xff]   ;;  %v370_v54 = vsub.s32 0, %v369_v53  ;;  %v374_v56 = vsub.s32 1, %v369_v53  ;;  %p918_p11 = scmp.lt.s32.totalorder %s553_s26, %s553_s26 }
  0xbd   :  { %v671_v16 = vld [vmem:[#allocation11 + $0x4] ss:$8 sps:$4 sm:$0xff]   ;;  %v674_v17 = vld [vmem:[#allocation11 + $0x14] ss:$8 sps:$4 sm:$0xff]   ;;  %v672_v18 = vld [vmem:[#allocation11 + $0x10] ss:$8 sps:$4 sm:$0xff]  }
  0xbe   :  { %v677_v19 = vld [vmem:[#allocation11 + $0x24] ss:$8 sps:$4 sm:$0xff]   ;;  %v675_v20 = vld [vmem:[#allocation11 + $0x20] ss:$8 sps:$4 sm:$0xff]   ;;  %v680_v21 = vld [vmem:[#allocation11 + $0x34] ss:$8 sps:$4 sm:$0xff]  }
  0xbf   :  { %616 = vmatpush3.bf16.msra.mxu0 %v189_v5  ;;  %624 = vmatpush3.bf16.msra.mxu1 %v662_v8  ;;  %v678_v22 = vld [vmem:[#allocation11 + $0x30] ss:$8 sps:$4 sm:$0xff]   ;;  %v683_v23 = vld [vmem:[#allocation11 + $0x44] ss:$8 sps:$4 sm:$0xff]   ;;  %v681_v24 = vld [vmem:[#allocation11 + $0x40] ss:$8 sps:$4 sm:$0xff]  }
  0xc0   :  { %625 = vmatprep.subr.bf16.mxu1 %v963_v0  ;;  %458 = vmatprep.subr.bf16.mxu0 %v671_v16  ;;  %v686_v25 = vld [vmem:[#allocation11 + $0x54] ss:$8 sps:$4 sm:$0xff]   ;;  %v684_v26 = vld [vmem:[#allocation11 + $0x50] ss:$8 sps:$4 sm:$0xff]   ;;  %v689_v37 = vld [vmem:[#allocation11 + $0x64] ss:$8 sps:$4 sm:$0xff]  }
  0xc1   :  { %v569_v27 = vld [vmem:[#allocation7] ss:$0 sm:$0xff]  ;;  %v687_v38 = vld [vmem:[#allocation11 + $0x60] ss:$8 sps:$4 sm:$0xff]   ;;  %v690_v40 = vld [vmem:[#allocation11 + $0x70] ss:$8 sps:$4 sm:$0xff]  }
  0xc2   :  { %618 = vmatmul.mubr.msk.bf16.vlgmr.msra.gmra.mrb[0].mxu0 %vm183_vm2, %v163_v7  ;;  %v692_v39 = vld [vmem:[#allocation11 + $0x74] ss:$8 sps:$4 sm:$0xff]   ;;  %v366_v55 = vld [vmem:[#allocation13] sm:$0x3]  ;;  %v599_v4 = vld [vmem:[#allocation16] ss:$0 sm:$0xff] }
  0xc3   :  { %626 = vmatpush3.bf16.msra.mxu1 %v663_v9  ;;  %459 = vmatpush1.bf16.msra.mxu0 %v669_v15  ;;  %v573_v42 = vld [vmem:[#allocation10] ss:$0 sm:$0xff]  ;;  %v371_v57 = vrot.slane %v366_v55, %v370_v54  ;;  %v375_v58 = vrot.slane %v366_v55, %v374_v56  ;;  %v600_v15 = vld [vmem:[#allocation17] ss:$0 sm:$0xff]  ;;  %s913_s27 = scalar_lea.vmem %s553_s26, 256 }
  0xc4   :  { %627 = vmatprep.subr.bf16.mxu1 %v963_v0  ;;  %460 = vmatprep.subr.bf16.mxu0 %v674_v17  ;;  %p914_p10 = scmp.ne.s32.totalorder %s553_s26, %s913_s27  ;;  %p919_p12 = scmp.lt.s32.totalorder %s913_s27, %s913_s27 }
  0xc5   :  { %490 = vmatprep.mubr.bf16.mxu0 %v965_v41 }
  0xc6   :  { %p920_p13 = por %p919_p12, %p918_p11 }
  0xc7   :  { %628 = vmatpush3.bf16.msra.mxu1 %v664_v10  ;;  %461 = vmatpush1.bf16.msra.mxu0 %v672_v18 }
  0xc8   :  { %629 = vmatprep.subr.bf16.mxu1 %v963_v0  ;;  %462 = vmatprep.subr.bf16.mxu0 %v677_v19  ;;  %p921_p0 = pnand %p920_p13, %p914_p10 }
  0xcb   :  { %630 = vmatpush3.bf16.msra.mxu1 %v665_v11  ;;  %463 = vmatpush1.bf16.msra.mxu0 %v675_v20 }
  0xcc   :  { %631 = vmatprep.subr.bf16.mxu1 %v963_v0  ;;  %464 = vmatprep.subr.bf16.mxu0 %v680_v21 }
  0xcf   :  { %632 = vmatpush3.bf16.msra.mxu1 %v666_v12  ;;  %465 = vmatpush1.bf16.msra.mxu0 %v678_v22 }
  0xd0   :  { %633 = vmatprep.subr.bf16.mxu1 %v963_v0  ;;  %466 = vmatprep.subr.bf16.mxu0 %v683_v23 }
  0xd3   :  { %634 = vmatpush3.bf16.msra.mxu1 %v667_v13  ;;  %467 = vmatpush1.bf16.msra.mxu0 %v681_v24  ;;  %v532_v13 = vand.u32 127, %v368_v52 }
  0xd4   :  { %635 = vmatprep.subr.bf16.mxu1 %v963_v0  ;;  %468 = vmatprep.subr.bf16.mxu0 %v686_v25  ;;  %v598_v0 = vld [vmem:[#allocation14] ss:$0 sm:$0xff] }
  0xd5   :  { %vm533_vm3 = vcmp.lt.s32.totalorder %v532_v13, 64 }
  0xd7   :  { %636 = vmatpush3.bf16.msra.mxu1 %v668_v14  ;;  %469 = vmatpush1.bf16.msra.mxu0 %v684_v26 }
  0xd8   :  { %470 = vmatprep.subr.bf16.mxu0 %v689_v37 }
  0xdb   :  { %471 = vmatpush1.bf16.msra.mxu0 %v687_v38 }
  0xdc   :  { %472 = vmatprep.subr.bf16.mxu0 %v692_v39 }
  0xdf   :  { %473 = vmatpush1.bf16.msra.mxu0 %v690_v40 }
 0x195   :  { %v225_v28 = vpop.f32.mrb[0].mxu0 }
 0x196   :  { %v226_v29 = vadd.f32 %v569_v27, %v225_v28  ;;  %v619_v30 = vpop.f32.mrb[1].mxu0 }
 0x197   :  { %v228_v31 = vpop.f32.mrb[2].mxu0 }
 0x198   :  { %v229_v32 = vadd.f32 %v569_v27, %v228_v31  ;;  %v620_v33 = vpop.f32.mrb[3].mxu0  ;;  %v232_v34 = vmax.f32 %v226_v29, 0.0 }
 0x19a   :  { %v233_v35 = vmax.f32 %v229_v32, 0.0 }
 0x19c   :  { %v234_v36 = vpack.c.bf16 %v233_v35, %v232_v34 }
 0x19e   :  { %638 = vmatmul.mubr.bf16.vlgmr.msra.gmra.mrb[0].mxu1 %v234_v36 }
 0x271   :  { %v340_v43 = vpop.f32.mrb[0].mxu1 }
 0x272   :  { %v341_v44 = vadd.f32 %v573_v42, %v340_v43  ;;  %v639_v45 = vpop.f32.mrb[1].mxu1 }
 0x273   :  { %v343_v46 = vpop.f32.mrb[2].mxu1 }
 0x274   :  { %v344_v47 = vadd.f32 %v573_v42, %v343_v46  ;;  %v640_v48 = vpop.f32.mrb[3].mxu1  ;;  %v347_v49 = vmax.f32 %v341_v44, 0.0 }
 0x276   :  { %v348_v50 = vmax.f32 %v344_v47, 0.0 }
 0x278   :  { %v349_v51 = vpack.c.bf16 %v348_v50, %v347_v49 }
 0x27a   :  { %491 = vmatmul.mubr.bf16.vlgmr.msra.gmra.mrb[4].mxu0 %v349_v51 }
 0x34d   :  { %v492_v59 = vpop.f32.mrb[4].mxu0 }
 0x34e   :  { %v493_v60 = vadd.f32 %v492_v59, %v371_v57  ;;  %v494_v61 = vpop.f32.mrb[5].mxu0 }
 0x34f   :  { %v495_v62 = vadd.f32 %v494_v61, %v375_v58  ;;  %v496_v63 = vpop.f32.mrb[6].mxu0 }
 0x350   :  { %v501_v1 = vmax.f32 %v493_v60, 0.0  ;;  %v497_v2 = vadd.f32 %v496_v63, %v371_v57  ;;  %v498_v3 = vpop.f32.mrb[7].mxu0 }
 0x351   :  { %v502_v5 = vmax.f32 %v495_v62, 0.0  ;;  %v499_v6 = vadd.f32 %v498_v3, %v375_v58 }
 0x352   :  { %v503_v7 = vmax.f32 %v497_v2, 0.0  ;;  %v512_v8 = vmul.f32 %v598_v0, %v501_v1 }
 0x353   :  { %v504_v9 = vmax.f32 %v499_v6, 0.0  ;;  %v525_v10 = vmul.f32 %v599_v4, %v502_v5 }
 0x354   :  { %514 = vadd.xlane.f32.xlu0 %v512_v8  ;;  %v513_v11 = vmul.f32 %v598_v0, %v503_v7 }
 0x355   :  { %527 = vadd.xlane.f32.xlu1 %v525_v10  ;;  %v526_v12 = vmul.f32 %v599_v4, %v504_v9 }
 0x358   :  { %516 = vadd.xlane.f32.xlu0 %v513_v11 }
 0x359   :  { %529 = vadd.xlane.f32.xlu1 %v526_v12 }
 0x3e1   :  { %v515_v14 = vpop.xlane.xlu0 %514 }
 0x3e2   :  { %v528_v16 = vpop.xlane.xlu1 %527 }
 0x3e3   :  { %v534_v17 = vsel %vm533_vm3, %v515_v14, %v528_v16 }
 0x3e4   :  { %v543_v18 = vadd.f32 %v600_v15, %v534_v17 }
 0x3e5   :  { %v517_v19 = vpop.xlane.xlu0 %516 }
 0x3e6   :  { %545 = vst [vmem:[#allocation19] sm:$0xff] %v543_v18  ;;  %v530_v20 = vpop.xlane.xlu1 %529 }
 0x3e7   :  { %v535_v21 = vsel %vm533_vm3, %v517_v19, %v530_v20 }
 0x3e8   :  { %v544_v22 = vadd.f32 %v600_v15, %v535_v21 }
 0x3ea   :  { %546 = vst [vmem:[#allocation19 + $0x8] sm:$0xff] %v544_v22 }
 0x3eb   :  { %924 = shalt.err (!%p921_p0)
}
 0x3ec   :  { %s925_s28 = scalar_lea.hbm %s1181_s10, 256 }
 0x3ed   :  { %p926_p1 = scmp.ne.s32.totalorder %s1181_s10, %s925_s28  ;;  %p929_p2 = scmp.lt.u32.totalorder %s925_s28, %s1181_s10 }
 0x3ef   :  { %p931_p3 = pnand %p929_p2, %p926_p1 }
 0x3f1   :  { %934 = shalt.err (!%p931_p3)
}
 0x3f2   :  { %558 = dma.vmem_to_hbm [thread:$0]  %s553_s26, 256, %s1181_s10, [#allocation4], %s955_s23, %s955_s23, %s956_s24  }
 0x3f3   :  { %947 = dma.done.wait [#allocation4], 256  }
 0x3f4   :  { %948 = vsyncadd [#allocation4], 4294967040 }
 0x3f5   :  { %562 = vsyncpa [#allocation3], 1 }
 0x3f6   :  { %563 = vsyncpa [#allocation6], 1 }
 0x3f7   :  { %564 = vsyncpa [#allocation9], 1 }
 0x3f8   :  { %565 = vsyncpa [#allocation12], 1 }
 0x3f9   :  { %566 = vsyncpa [#allocation15], 1 }
 0x3fa   :  { %567 = vsyncpa [#allocation18], 1 }
 0x3fb   :  { %568 = vsyncpa [#allocation4], 1 }

</bundles_post_ra>
